<compile_context>
chip_gen: v6e
topology: v6e:2x2x1
jax: 0.10.0
libtpu: 0.0.40
codegen_flags: <defaults>
</compile_context>

<pallas_src>
import functools

import numpy as np
import jax
import jax.numpy as jnp
from jax import lax
from jax.experimental import pallas as pl
from jax.experimental.pallas import tpu as pltpu

NEG = -1.0e30          # finite -inf sentinel (avoids inf-inf NaNs); impossible paths stay ~ -1e30
CLASS_PAD = -3.0e4     # pad value for padded classes: exp() underflows to 0, finite in any dtype
NB = 16                # examples packed per grid block: 2 independent (8,128) alpha vregs -> ILP
LP = 128               # extended-label axis padded to one lane width (needs 2*S+1 <= 128)
TIME_CHUNK = 128       # time steps streamed per grid step
CLASS_CHUNK = 512      # classes streamed per grid step (online logsumexp across chunks)
VMEM_LIMIT = 48 * 1024 * 1024   # below v7x's 64 MiB physical, above the 32 MiB default scoped limit


def _swap01(x):
    """(NB, Tc, LP) -> (Tc, NB, LP): one sublane shuffle per chunk, amortized over Tc steps."""
    if hasattr(pltpu, "einshape"):
        try:
            return pltpu.einshape("btl->tbl", x)
        except Exception:
            pass
    return jnp.transpose(x, (1, 0, 2))


def _ctc_kernel(blk_tmax_ref,            # SMEM prefetch: (nb,) int32 per-block max input length
                logits_ref,              # VMEM (1, NB, Tc, Cc): raw logits tile
                ext_ref,                 # VMEM (NB, LP) int32: extended labels (blank interleaved)
                m2_ref,                  # VMEM (NB, LP) f32: additive l-2 (skip) mask (0 / NEG)
                tb_ref,                  # VMEM (NB, 1) int32: input lengths
                sb_ref,                  # VMEM (NB, 1) int32: target lengths
                out_ref,                 # VMEM (NB, LP) f32: per-example loss (lane-broadcast)
                emit_ref,                # scratch (Tpad*NB, LP) f32: emission log-probs, row = t*NB+b
                gacc_ref,                # scratch (NB, Tc, LP) f32: per-chunk gathered-logit accum
                zm_ref,                  # scratch (NB, Tc, 1) f32: online logsumexp running max
                zs_ref,                  # scratch (NB, Tc, 1) f32: online logsumexp running sum
                *, gather_dtype=jnp.float32):
    g = pl.program_id(0)
    tc = pl.program_id(1)
    cc = pl.program_id(2)
    n_tc = pl.num_programs(1)
    n_cc = pl.num_programs(2)
    Tc = logits_ref.shape[2]
    Cc = logits_ref.shape[3]
    Lp = out_ref.shape[1]

    tmax = blk_tmax_ref[g]                       # longest input length packed in this block

    # ---------------- preprocessing: normalizer + one-hot gather, per (time, class) chunk ----------
    # EUP work (exp/log of the normalizer) and MXU work (one-hot gather matmul) share the chunk body
    # so they co-issue; dead time chunks (beyond this block's longest example) skip compute.  Chunk 0
    # is always processed so emit rows at t=0 are defined for every block.
    @pl.when((tc == 0) | (tc * Tc < tmax))
    def _preprocess():
        x = logits_ref[0].astype(jnp.float32)                            # (NB, Tc, Cc)

        @pl.when(cc == 0)
        def _init():
            zm_ref[...] = jnp.full_like(zm_ref, NEG)
            zs_ref[...] = jnp.zeros_like(zs_ref)
            gacc_ref[...] = jnp.zeros_like(gacc_ref)

        # online logsumexp over the class axis: z = log sum_c exp(x)  (EUP-bound)
        cmax = jnp.max(x, axis=2, keepdims=True)                         # (NB, Tc, 1)
        m_old = zm_ref[...]
        m_new = jnp.maximum(m_old, cmax)
        zs_ref[...] = (zs_ref[...] * jnp.exp(m_old - m_new)
                       + jnp.sum(jnp.exp(x - m_new), axis=2, keepdims=True))
        zm_ref[...] = m_new

        # batched per-example one-hot gather of extended-label emission logits (MXU-bound).
        ext = ext_ref[...]                                               # (NB, LP) int32
        cls = lax.broadcasted_iota(jnp.int32, (NB, Cc, Lp), 1) + cc * Cc
        onehot = (cls == ext[:, None, :]).astype(gather_dtype)           # exact in bf16 too
        gath = jnp.einsum('btc,bcl->btl', x.astype(gather_dtype), onehot,
                          preferred_element_type=jnp.float32)            # (NB, Tc, LP)
        gacc_ref[...] += gath

        @pl.when(cc == n_cc - 1)
        def _finalize_chunk():
            z = zm_ref[...] + jnp.log(zs_ref[...])                       # (NB, Tc, 1)
            chunk = gacc_ref[...] - z                                    # emission log-probs
            chunk = _swap01(chunk)                                       # (Tc, NB, LP)
            base = pl.multiple_of(tc * (Tc * NB), NB)
            emit_ref[pl.ds(base, Tc * NB), :] = chunk.reshape(Tc * NB, Lp)

    # ---------------- CTC forward (alpha) recursion + loss, once per block ----------------
    @pl.when((tc == n_tc - 1) & (cc == n_cc - 1))
    def _recursion():
        lane = lax.broadcasted_iota(jnp.int32, (NB, Lp), 1)
        m1 = jnp.where(lane >= 1, 0.0, NEG).astype(jnp.float32)          # l-1 mask (loop-invariant)
        m2 = m2_ref[...]                                                 # l-2 (skip) mask
        tb = tb_ref[...]                                                 # (NB, 1) input lengths
        sb = sb_ref[...]                                                 # (NB, 1) target lengths

        emit0 = emit_ref[pl.ds(0, NB), :]                                # (NB, LP) at t = 0
        alpha0 = jnp.where(lane == 0, emit0,
                           jnp.where((lane == 1) & (sb >= 1), emit0, NEG))

        def body(t, alpha):
            # emit load is off the dependency chain -> issues early under the serial lse chain
            emit_t = emit_ref[pl.ds(pl.multiple_of(t * NB, NB), NB), :]
            a0 = alpha
            a1 = pltpu.roll(alpha, shift=1, axis=1) + m1
            a2 = pltpu.roll(alpha, shift=2, axis=1) + m2
            mx = jnp.maximum(jnp.maximum(a0, a1), a2)
            lse = mx + jnp.log(jnp.exp(a0 - mx) + jnp.exp(a1 - mx) + jnp.exp(a2 - mx))
            new = jnp.maximum(emit_t + lse, NEG)
            return jnp.where(t < tb, new, alpha)                         # freeze finished examples

        alpha = lax.fori_loop(1, tmax, body, alpha0)

        # loss_b = -logsumexp(alpha[2*Sb], alpha[2*Sb - 1]) per sublane
        end1 = 2 * sb
        end2 = 2 * sb - 1
        a_e1 = jnp.max(jnp.where(lane == end1, alpha, NEG), axis=1, keepdims=True)
        a_e2 = jnp.max(jnp.where(lane == end2, alpha, NEG), axis=1, keepdims=True)
        a_e2 = jnp.where(sb >= 1, a_e2, NEG)
        mxe = jnp.maximum(a_e1, a_e2)
        ll = mxe + jnp.log(jnp.exp(a_e1 - mxe) + jnp.exp(a_e2 - mxe))
        loss = -ll
        # zero_infinity=True: impossible alignments -> 0; padded rows (tb == 0) -> 0
        loss = jnp.where((loss > 1e29) | jnp.isnan(loss), 0.0, loss)
        loss = jnp.where(tb >= 1, loss, 0.0)
        out_ref[...] = jnp.broadcast_to(loss, (NB, Lp))                  # lane-dense write


def ctc_loss_pallas(output_tensor, output_lengths, target_tensor, target_lengths,
                    blank=0, gather_dtype=jnp.float32):
    """log_softmax(dim=2) + CTCLoss(reduction='sum', zero_infinity=True).

    output_tensor: (B, T, C) logits; target labels must lie in [0, C) and differ from `blank`.
    gather_dtype: use jnp.bfloat16 on v5e (bf16-native MXU); costs ~1e-3 rel error on emissions.
    """
    B, T, C = output_tensor.shape
    S = target_tensor.shape[1]
    assert 2 * S + 1 <= LP, "target sequence too long for this kernel (needs 2*S+1 <= 128)"

    out_len = jnp.clip(output_lengths.astype(jnp.int32), 0, T)
    tgt_len = jnp.clip(target_lengths.astype(jnp.int32), 0, S)
    targets = target_tensor.astype(jnp.int32)

    # ---- length bucketing: sort by input length so the NB examples packed per block have similar
    #      lengths (one long utterance no longer forces full-T work for 15 short ones).
    #      reduction='sum' is permutation-invariant, so sorting is free semantically.
    order = jnp.argsort(-out_len)
    x_sorted = jnp.take(output_tensor, order, axis=0)
    out_len = jnp.take(out_len, order)
    tgt_len = jnp.take(tgt_len, order)
    targets = jnp.take(targets, order, axis=0)

    # ---- batch padding: NB examples per block; even #blocks keeps v7x's 2 TensorCores balanced.
    nb = -(-B // NB)
    nb += nb % 2
    Bpad = nb * NB
    pad_b = Bpad - B

    out_len_p = jnp.pad(out_len, (0, pad_b))
    tgt_len_p = jnp.pad(tgt_len, (0, pad_b))
    blk_tmax = jnp.max(out_len_p.reshape(nb, NB), axis=1)                # (nb,) dynamic trip bound

    # ---- extended label sequence (blank, y1, blank, ..., blank) + l-2 (skip) transition mask.
    ext = jnp.full((B, LP), blank, jnp.int32).at[:, 1:2 * S + 1:2].set(targets)
    ext_prev2 = jnp.pad(ext[:, :-2], ((0, 0), (2, 0)), constant_values=-1)
    lpos = jnp.arange(LP)[None, :]
    skip_ok = (lpos >= 2) & (ext != blank) & (ext != ext_prev2)
    m2 = jnp.where(skip_ok, 0.0, NEG).astype(jnp.float32)

    ext_p = jnp.pad(ext, ((0, pad_b), (0, 0)), constant_values=blank)
    m2_p = jnp.pad(m2, ((0, pad_b), (0, 0)), constant_values=NEG)

    # ---- time / class chunking so streamed tiles stay small at production shapes.
    Tc = T if T <= TIME_CHUNK else TIME_CHUNK
    Tpad = -(-T // Tc) * Tc
    Cc = C if C <= CLASS_CHUNK else CLASS_CHUNK
    Cpad = -(-C // Cc) * Cc

    x_p = x_sorted
    if Cpad > C:
        # padded classes: exp() underflows to 0 in the normalizer; never selected by the one-hot,
        # and finite so the 0 * x gather product stays exactly 0 (never NaN).
        x_p = jnp.pad(x_p, ((0, 0), (0, 0), (0, Cpad - C)), constant_values=CLASS_PAD)
    x_p = jnp.pad(x_p, ((0, pad_b), (0, Tpad - T), (0, 0)))
    x_blk = x_p.reshape(nb, NB, Tpad, Cpad)

    tb_col = out_len_p.reshape(Bpad, 1)
    sb_col = tgt_len_p.reshape(Bpad, 1)

    n_tc = Tpad // Tc
    n_cc = Cpad // Cc

    grid_spec = pltpu.PrefetchScalarGridSpec(
        num_scalar_prefetch=1,
        grid=(nb, n_tc, n_cc),
        in_specs=[
            pl.BlockSpec((1, NB, Tc, Cc), lambda g, t, c, bt: (g, 0, t, c)),  # streamed logits tile
            pl.BlockSpec((NB, LP), lambda g, t, c, bt: (g, 0)),               # extended labels
            pl.BlockSpec((NB, LP), lambda g, t, c, bt: (g, 0)),               # l-2 skip mask
            pl.BlockSpec((NB, 1), lambda g, t, c, bt: (g, 0)),                # input lengths
            pl.BlockSpec((NB, 1), lambda g, t, c, bt: (g, 0)),                # target lengths
        ],
        out_specs=pl.BlockSpec((NB, LP), lambda g, t, c, bt: (g, 0)),
        scratch_shapes=[
            pltpu.VMEM((Tpad * NB, LP), jnp.float32),   # emission log-probs, row = t*NB + b
            pltpu.VMEM((NB, Tc, LP), jnp.float32),      # per-chunk gather accumulator
            pltpu.VMEM((NB, Tc, 1), jnp.float32),       # online logsumexp running max
            pltpu.VMEM((NB, Tc, 1), jnp.float32),       # online logsumexp running sum
        ],
    )
    losses = pl.pallas_call(
        functools.partial(_ctc_kernel, gather_dtype=gather_dtype),
        out_shape=jax.ShapeDtypeStruct((Bpad, LP), jnp.float32),
        grid_spec=grid_spec,
        compiler_params=pltpu.CompilerParams(
            dimension_semantics=("parallel", "arbitrary", "arbitrary"),
            vmem_limit_bytes=VMEM_LIMIT),
    )(blk_tmax, x_blk, ext_p, m2_p, tb_col, sb_col)

    return jnp.sum(losses[:B, 0])                        # reduction='sum' over the batch


def _ctc_loss_reference(logits, out_lens, targets, tgt_lens, blank=0):
    """Independent numpy reference (same semantics as torch.nn.CTCLoss, sum, zero_infinity)."""
    logits = np.asarray(logits, np.float64)
    B, T, C = logits.shape
    mx = logits.max(axis=2, keepdims=True)
    logp = logits - (mx + np.log(np.exp(logits - mx).sum(axis=2, keepdims=True)))
    total = 0.0
    for b in range(B):
        Tb, Sb = int(out_lens[b]), int(tgt_lens[b])
        ext = [blank]
        for s in range(Sb):
            ext += [int(targets[b, s]), blank]
        L = len(ext)
        alpha = np.full(L, NEG)
        alpha[0] = logp[b, 0, ext[0]]
        if L > 1:
            alpha[1] = logp[b, 0, ext[1]]
        for t in range(1, Tb):
            new = np.full(L, NEG)
            for l in range(L):
                cands = [alpha[l]]
                if l >= 1:
                    cands.append(alpha[l - 1])
                if l >= 2 and ext[l] != blank and ext[l] != ext[l - 2]:
                    cands.append(alpha[l - 2])
                m = max(cands)
                new[l] = logp[b, t, ext[l]] + m + np.log(sum(np.exp(c - m) for c in cands))
            alpha = new
        ends = [alpha[L - 1]] + ([alpha[L - 2]] if L >= 2 else [])
        m = max(ends)
        loss = -(m + np.log(sum(np.exp(e - m) for e in ends)))
        if loss > 1e29 or np.isnan(loss):
            loss = 0.0
        total += loss
    return total


if __name__ == "__main__":
    key = jax.random.PRNGKey(0)
    B, T, C, S = 2, 8, 16, 3
    k1, k2 = jax.random.split(key)

    output_tensor = jax.random.normal(k1, (B, T, C), jnp.float32)     # (batch, time, classes)
    target_tensor = jax.random.randint(k2, (B, S), 1, C, jnp.int32)   # labels in [1, C), 0 = blank
    output_lengths = jnp.array([T, T - 2], jnp.int32)
    target_lengths = jnp.array([S, S - 1], jnp.int32)

    loss = ctc_loss_pallas(output_tensor, output_lengths, target_tensor, target_lengths)
    loss = jax.block_until_ready(loss)

    ref = _ctc_loss_reference(np.asarray(output_tensor), np.asarray(output_lengths),
                              np.asarray(target_tensor), np.asarray(target_lengths))
    np.testing.assert_allclose(float(loss), ref, rtol=1e-4, atol=1e-3)

    print("KERNEL_OK")
</pallas_src>

<mosaic_0001>
module attributes {stable_mosaic.version = 11 : i64} {
  func.func @_ctc_kernel(%arg0: i32, %arg1: i32, %arg2: i32, %arg3: memref<2xi32, #tpu.memory_space<smem>>, %arg4: memref<1x16x8x16xf32, #tpu.memory_space<vmem>>, %arg5: memref<16x128xi32, #tpu.memory_space<vmem>>, %arg6: memref<16x128xf32, #tpu.memory_space<vmem>>, %arg7: memref<16x1xi32, #tpu.memory_space<vmem>>, %arg8: memref<16x1xi32, #tpu.memory_space<vmem>>, %arg9: memref<16x128xf32, #tpu.memory_space<vmem>>, %arg10: memref<128x128xf32, #tpu.memory_space<vmem>>, %arg11: memref<16x8x128xf32, #tpu.memory_space<vmem>>, %arg12: memref<16x8x1xf32, #tpu.memory_space<vmem>>, %arg13: memref<16x8x1xf32, #tpu.memory_space<vmem>>) attributes {dimension_semantics = [#tpu.dimension_semantics<parallel>, #tpu.dimension_semantics<arbitrary>, #tpu.dimension_semantics<arbitrary>], iteration_bounds = array<i64: 2, 1, 1>, scalar_prefetch = 1 : i64, scratch_operands = 4 : i64, tpu.core_type = #tpu.core_type<tc>, window_params = [{transform_indices = @transform_0, window_bounds = array<i64: 1, 16, 8, 16>}, {transform_indices = @transform_1, window_bounds = array<i64: 16, 128>}, {transform_indices = @transform_2, window_bounds = array<i64: 16, 128>}, {transform_indices = @transform_3, window_bounds = array<i64: 16, 1>}, {transform_indices = @transform_4, window_bounds = array<i64: 16, 1>}, {transform_indices = @transform_5, window_bounds = array<i64: 16, 128>}]} {
    %0 = arith.index_cast %arg0 : i32 to index
    %1 = memref.load %arg3[%0] : memref<2xi32, #tpu.memory_space<smem>>
    %c0_i32 = arith.constant 0 : i32
    %2 = arith.cmpi eq, %arg1, %c0_i32 : i32
    %c8_i32 = arith.constant 8 : i32
    %3 = arith.muli %arg1, %c8_i32 : i32
    %4 = arith.cmpi slt, %3, %1 : i32
    %5 = arith.ori %2, %4 : i1
    %6 = arith.extui %5 : i1 to i32
    %c0_i32_0 = arith.constant 0 : i32
    %7 = arith.cmpi ne, %6, %c0_i32_0 : i32
    scf.if %7 {
      %c0 = arith.constant 0 : index
      %c0_4 = arith.constant 0 : index
      %c0_5 = arith.constant 0 : index
      %c0_6 = arith.constant 0 : index
      %13 = vector.load %arg4[%c0, %c0_4, %c0_5, %c0_6] : memref<1x16x8x16xf32, #tpu.memory_space<vmem>>, vector<1x16x8x16xf32>
      %14 = vector.shape_cast %13 : vector<1x16x8x16xf32> to vector<16x8x16xf32>
      %c0_i32_7 = arith.constant 0 : i32
      %15 = arith.cmpi eq, %arg2, %c0_i32_7 : i32
      %16 = arith.extui %15 : i1 to i32
      %c0_i32_8 = arith.constant 0 : i32
      %17 = arith.cmpi ne, %16, %c0_i32_8 : i32
      scf.if %17 {
        %cst_33 = arith.constant -1.000000e+30 : f32
        %51 = vector.broadcast %cst_33 : f32 to vector<16x8x1xf32>
        %c0_34 = arith.constant 0 : index
        %c0_35 = arith.constant 0 : index
        %c0_36 = arith.constant 0 : index
        %52 = vector.load %arg12[%c0_34, %c0_35, %c0_36] : memref<16x8x1xf32, #tpu.memory_space<vmem>>, vector<16x8x1xf32>
        tpu.vector_store %arg12[%c0_34, %c0_35, %c0_36], %51 {strides = array<i32>} : memref<16x8x1xf32, #tpu.memory_space<vmem>>, vector<16x8x1xf32>,
        %cst_37 = arith.constant 0.000000e+00 : f32
        %53 = vector.broadcast %cst_37 : f32 to vector<16x8x1xf32>
        %c0_38 = arith.constant 0 : index
        %c0_39 = arith.constant 0 : index
        %c0_40 = arith.constant 0 : index
        %54 = vector.load %arg13[%c0_38, %c0_39, %c0_40] : memref<16x8x1xf32, #tpu.memory_space<vmem>>, vector<16x8x1xf32>
        tpu.vector_store %arg13[%c0_38, %c0_39, %c0_40], %53 {strides = array<i32>} : memref<16x8x1xf32, #tpu.memory_space<vmem>>, vector<16x8x1xf32>,
        %cst_41 = arith.constant 0.000000e+00 : f32
        %55 = vector.broadcast %cst_41 : f32 to vector<16x8x128xf32>
        %c0_42 = arith.constant 0 : index
        %c0_43 = arith.constant 0 : index
        %c0_44 = arith.constant 0 : index
        %56 = vector.load %arg11[%c0_42, %c0_43, %c0_44] : memref<16x8x128xf32, #tpu.memory_space<vmem>>, vector<16x8x128xf32>
        tpu.vector_store %arg11[%c0_42, %c0_43, %c0_44], %55 {strides = array<i32>} : memref<16x8x128xf32, #tpu.memory_space<vmem>>, vector<16x8x128xf32>,
      } else {
      }
      %cst = arith.constant dense<0xFF800000> : vector<16x8xf32>
      %18 = vector.multi_reduction <maximumf>, %14, %cst [2] : vector<16x8x16xf32> to vector<16x8xf32>
      %19 = vector.shape_cast %18 : vector<16x8xf32> to vector<16x8x1xf32>
      %c0_9 = arith.constant 0 : index
      %c0_10 = arith.constant 0 : index
      %c0_11 = arith.constant 0 : index
      %20 = vector.load %arg12[%c0_9, %c0_10, %c0_11] : memref<16x8x1xf32, #tpu.memory_space<vmem>>, vector<16x8x1xf32>
      %21 = arith.maximumf %20, %19 : vector<16x8x1xf32>
      %c0_12 = arith.constant 0 : index
      %c0_13 = arith.constant 0 : index
      %c0_14 = arith.constant 0 : index
      %22 = vector.load %arg13[%c0_12, %c0_13, %c0_14] : memref<16x8x1xf32, #tpu.memory_space<vmem>>, vector<16x8x1xf32>
      %23 = arith.subf %20, %21 : vector<16x8x1xf32>
      %24 = math.exp %23 : vector<16x8x1xf32>
      %25 = arith.mulf %22, %24 : vector<16x8x1xf32>
      %26 = vector.broadcast %21 : vector<16x8x1xf32> to vector<16x8x16xf32>
      %27 = arith.subf %14, %26 : vector<16x8x16xf32>
      %28 = math.exp %27 : vector<16x8x16xf32>
      %cst_15 = arith.constant dense<0.000000e+00> : vector<16x8xf32>
      %29 = vector.multi_reduction <add>, %28, %cst_15 [2] : vector<16x8x16xf32> to vector<16x8xf32>
      %30 = vector.shape_cast %29 : vector<16x8xf32> to vector<16x8x1xf32>
      %31 = arith.addf %25, %30 : vector<16x8x1xf32>
      %c0_16 = arith.constant 0 : index
      %c0_17 = arith.constant 0 : index
      %c0_18 = arith.constant 0 : index
      %32 = vector.load %arg13[%c0_16, %c0_17, %c0_18] : memref<16x8x1xf32, #tpu.memory_space<vmem>>, vector<16x8x1xf32>
      tpu.vector_store %arg13[%c0_16, %c0_17, %c0_18], %31 {strides = array<i32>} : memref<16x8x1xf32, #tpu.memory_space<vmem>>, vector<16x8x1xf32>,
      %c0_19 = arith.constant 0 : index
      %c0_20 = arith.constant 0 : index
      %c0_21 = arith.constant 0 : index
      %33 = vector.load %arg12[%c0_19, %c0_20, %c0_21] : memref<16x8x1xf32, #tpu.memory_space<vmem>>, vector<16x8x1xf32>
      tpu.vector_store %arg12[%c0_19, %c0_20, %c0_21], %21 {strides = array<i32>} : memref<16x8x1xf32, #tpu.memory_space<vmem>>, vector<16x8x1xf32>,
      %c0_22 = arith.constant 0 : index
      %c0_23 = arith.constant 0 : index
      %34 = vector.load %arg5[%c0_22, %c0_23] : memref<16x128xi32, #tpu.memory_space<vmem>>, vector<16x128xi32>
      %35 = tpu.iota {dimensions = array<i32: 1>} : vector<16x16x128xi32>
      %c16_i32 = arith.constant 16 : i32
      %36 = arith.muli %arg2, %c16_i32 : i32
      %37 = vector.broadcast %36 : i32 to vector<16x16x128xi32>
      %38 = arith.addi %35, %37 : vector<16x16x128xi32>
      %39 = vector.shape_cast %34 : vector<16x128xi32> to vector<16x1x128xi32>
      %40 = vector.broadcast %39 : vector<16x1x128xi32> to vector<16x16x128xi32>
      %41 = arith.cmpi eq, %38, %40 : vector<16x16x128xi32>
      %42 = arith.extui %41 : vector<16x16x128xi1> to vector<16x16x128xi32>
      %43 = arith.sitofp %42 : vector<16x16x128xi32> to vector<16x16x128xf32>
      "tpu.trace_start"() <{level = 10 : i32, message = "btc,bcl->btl"}> : () -> ()
      %cst_24 = arith.constant dense<0.000000e+00> : vector<16x8x128xf32>
      %44 = tpu.matmul %14, %43, %cst_24 {dimension_numbers = #tpu.dot_dimension_numbers<[2], [1], [1], [2], [0, 0, 0, 1, 1, 2], [0], [0]>} : vector<16x8x16xf32>, vector<16x16x128xf32>, vector<16x8x128xf32> -> vector<16x8x128xf32>
      "tpu.trace_stop"() : () -> ()
      %c0_25 = arith.constant 0 : index
      %c0_26 = arith.constant 0 : index
      %c0_27 = arith.constant 0 : index
      %45 = vector.load %arg11[%c0_25, %c0_26, %c0_27] : memref<16x8x128xf32, #tpu.memory_space<vmem>>, vector<16x8x128xf32>
      %46 = arith.addf %45, %44 : vector<16x8x128xf32>
      %c0_28 = arith.constant 0 : index
      %c0_29 = arith.constant 0 : index
      %c0_30 = arith.constant 0 : index
      %47 = vector.load %arg11[%c0_28, %c0_29, %c0_30] : memref<16x8x128xf32, #tpu.memory_space<vmem>>, vector<16x8x128xf32>
      tpu.vector_store %arg11[%c0_28, %c0_29, %c0_30], %46 {strides = array<i32>} : memref<16x8x128xf32, #tpu.memory_space<vmem>>, vector<16x8x128xf32>,
      %c0_i32_31 = arith.constant 0 : i32
      %48 = arith.cmpi eq, %arg2, %c0_i32_31 : i32
      %49 = arith.extui %48 : i1 to i32
      %c0_i32_32 = arith.constant 0 : i32
      %50 = arith.cmpi ne, %49, %c0_i32_32 : i32
      scf.if %50 {
        %c0_33 = arith.constant 0 : index
        %c0_34 = arith.constant 0 : index
        %c0_35 = arith.constant 0 : index
        %51 = vector.load %arg12[%c0_33, %c0_34, %c0_35] : memref<16x8x1xf32, #tpu.memory_space<vmem>>, vector<16x8x1xf32>
        %c0_36 = arith.constant 0 : index
        %c0_37 = arith.constant 0 : index
        %c0_38 = arith.constant 0 : index
        %52 = vector.load %arg13[%c0_36, %c0_37, %c0_38] : memref<16x8x1xf32, #tpu.memory_space<vmem>>, vector<16x8x1xf32>
        %53 = math.log %52 : vector<16x8x1xf32>
        %54 = arith.addf %51, %53 : vector<16x8x1xf32>
        %c0_39 = arith.constant 0 : index
        %c0_40 = arith.constant 0 : index
        %c0_41 = arith.constant 0 : index
        %55 = vector.load %arg11[%c0_39, %c0_40, %c0_41] : memref<16x8x128xf32, #tpu.memory_space<vmem>>, vector<16x8x128xf32>
        %56 = vector.broadcast %54 : vector<16x8x1xf32> to vector<16x8x128xf32>
        %57 = arith.subf %55, %56 : vector<16x8x128xf32>
        %58 = tpu.transpose %57, [1, 0, 2] : vector<16x8x128xf32> -> vector<8x16x128xf32>
        %c128_i32 = arith.constant 128 : i32
        %59 = arith.muli %arg1, %c128_i32 : i32
        %60 = tpu.assume_multiple %59, 16 : i32
        %61 = vector.shape_cast %58 : vector<8x16x128xf32> to vector<128x128xf32>
        %62 = arith.index_cast %60 : i32 to index
        %c0_42 = arith.constant 0 : index
        %63 = vector.load %arg10[%62, %c0_42] : memref<128x128xf32, #tpu.memory_space<vmem>>, vector<128x128xf32>
        tpu.vector_store %arg10[%62, %c0_42], %61 {strides = array<i32>} : memref<128x128xf32, #tpu.memory_space<vmem>>, vector<128x128xf32>,
      } else {
      }
    } else {
    }
    %c0_i32_1 = arith.constant 0 : i32
    %8 = arith.cmpi eq, %arg1, %c0_i32_1 : i32
    %c0_i32_2 = arith.constant 0 : i32
    %9 = arith.cmpi eq, %arg2, %c0_i32_2 : i32
    %10 = arith.andi %8, %9 : i1
    %11 = arith.extui %10 : i1 to i32
    %c0_i32_3 = arith.constant 0 : i32
    %12 = arith.cmpi ne, %11, %c0_i32_3 : i32
    scf.if %12 {
      %13 = tpu.iota {dimensions = array<i32: 1>} : vector<16x128xi32>
      %c1_i32 = arith.constant 1 : i32
      %14 = vector.broadcast %c1_i32 : i32 to vector<16x128xi32>
      %15 = arith.cmpi sge, %13, %14 : vector<16x128xi32>
      %cst = arith.constant 0.000000e+00 : f32
      %cst_4 = arith.constant -1.000000e+30 : f32
      %16 = vector.broadcast %cst : f32 to vector<16x128xf32>
      %17 = vector.broadcast %cst_4 : f32 to vector<16x128xf32>
      %18 = arith.select %15, %16, %17 : vector<16x128xi1>, vector<16x128xf32>
      %c0 = arith.constant 0 : index
      %c0_5 = arith.constant 0 : index
      %19 = vector.load %arg6[%c0, %c0_5] : memref<16x128xf32, #tpu.memory_space<vmem>>, vector<16x128xf32>
      %c0_6 = arith.constant 0 : index
      %c0_7 = arith.constant 0 : index
      %20 = vector.load %arg7[%c0_6, %c0_7] : memref<16x1xi32, #tpu.memory_space<vmem>>, vector<16x1xi32>
      %c0_8 = arith.constant 0 : index
      %c0_9 = arith.constant 0 : index
      %21 = vector.load %arg8[%c0_8, %c0_9] : memref<16x1xi32, #tpu.memory_space<vmem>>, vector<16x1xi32>
      %c0_10 = arith.constant 0 : index
      %c0_11 = arith.constant 0 : index
      %22 = vector.load %arg10[%c0_10, %c0_11] : memref<128x128xf32, #tpu.memory_space<vmem>>, vector<16x128xf32>
      %c0_i32_12 = arith.constant 0 : i32
      %23 = vector.broadcast %c0_i32_12 : i32 to vector<16x128xi32>
      %24 = arith.cmpi eq, %13, %23 : vector<16x128xi32>
      %c1_i32_13 = arith.constant 1 : i32
      %25 = vector.broadcast %c1_i32_13 : i32 to vector<16x128xi32>
      %26 = arith.cmpi eq, %13, %25 : vector<16x128xi32>
      %c1_i32_14 = arith.constant 1 : i32
      %27 = vector.broadcast %c1_i32_14 : i32 to vector<16x1xi32>
      %28 = arith.cmpi sge, %21, %27 : vector<16x1xi32>
      %29 = vector.broadcast %28 : vector<16x1xi1> to vector<16x128xi1>
      %30 = arith.andi %26, %29 : vector<16x128xi1>
      %cst_15 = arith.constant -1.000000e+30 : f32
      %31 = vector.broadcast %cst_15 : f32 to vector<16x128xf32>
      %32 = arith.select %30, %22, %31 : vector<16x128xi1>, vector<16x128xf32>
      %33 = arith.select %24, %22, %32 : vector<16x128xi1>, vector<16x128xf32>
      %c1_i32_16 = arith.constant 1 : i32
      %34 = arith.subi %1, %c1_i32_16 : i32
      %35 = arith.addi %c1_i32_16, %34 : i32
      %c1_i32_17 = arith.constant 1 : i32
      %36 = scf.for %arg14 = %c1_i32_16 to %35 step %c1_i32_17 iter_args(%arg15 = %33) -> (vector<16x128xf32>)  : i32 {
        %c16_i32 = arith.constant 16 : i32
        %82 = arith.muli %arg14, %c16_i32 : i32
        %83 = tpu.assume_multiple %82, 16 : i32
        %84 = arith.index_cast %83 : i32 to index
        %c0_33 = arith.constant 0 : index
        %85 = vector.load %arg10[%84, %c0_33] : memref<128x128xf32, #tpu.memory_space<vmem>>, vector<16x128xf32>
        %c1_i32_34 = arith.constant 1 : i32
        %86 = tpu.dynamic_rotate %arg15 by %c1_i32_34 dim 1 : vector<16x128xf32>, i32 -> vector<16x128xf32>
        %87 = arith.addf %86, %18 : vector<16x128xf32>
        %c2_i32_35 = arith.constant 2 : i32
        %88 = tpu.dynamic_rotate %arg15 by %c2_i32_35 dim 1 : vector<16x128xf32>, i32 -> vector<16x128xf32>
        %89 = arith.addf %88, %19 : vector<16x128xf32>
        %90 = arith.maximumf %arg15, %87 : vector<16x128xf32>
        %91 = arith.maximumf %90, %89 : vector<16x128xf32>
        %92 = arith.subf %arg15, %91 : vector<16x128xf32>
        %93 = math.exp %92 : vector<16x128xf32>
        %94 = arith.subf %87, %91 : vector<16x128xf32>
        %95 = math.exp %94 : vector<16x128xf32>
        %96 = arith.addf %93, %95 : vector<16x128xf32>
        %97 = arith.subf %89, %91 : vector<16x128xf32>
        %98 = math.exp %97 : vector<16x128xf32>
        %99 = arith.addf %96, %98 : vector<16x128xf32>
        %100 = math.log %99 : vector<16x128xf32>
        %101 = arith.addf %91, %100 : vector<16x128xf32>
        %102 = arith.addf %85, %101 : vector<16x128xf32>
        %cst_36 = arith.constant -1.000000e+30 : f32
        %103 = vector.broadcast %cst_36 : f32 to vector<16x128xf32>
        %104 = arith.maximumf %102, %103 : vector<16x128xf32>
        %105 = vector.broadcast %arg14 : i32 to vector<16x1xi32>
        %106 = arith.cmpi slt, %105, %20 : vector<16x1xi32>
        %107 = vector.shape_cast %106 : vector<16x1xi1> to vector<16x1xi1>
        %108 = vector.broadcast %107 : vector<16x1xi1> to vector<16x128xi1>
        %109 = arith.select %108, %104, %arg15 : vector<16x128xi1>, vector<16x128xf32>
        scf.yield %109 : vector<16x128xf32>
      }
      %c2_i32 = arith.constant 2 : i32
      %37 = vector.broadcast %c2_i32 : i32 to vector<16x1xi32>
      %38 = arith.muli %37, %21 : vector<16x1xi32>
      %c2_i32_18 = arith.constant 2 : i32
      %39 = vector.broadcast %c2_i32_18 : i32 to vector<16x1xi32>
      %40 = arith.muli %39, %21 : vector<16x1xi32>
      %c1_i32_19 = arith.constant 1 : i32
      %41 = vector.broadcast %c1_i32_19 : i32 to vector<16x1xi32>
      %42 = arith.subi %40, %41 : vector<16x1xi32>
      %43 = vector.broadcast %38 : vector<16x1xi32> to vector<16x128xi32>
      %44 = arith.cmpi eq, %13, %43 : vector<16x128xi32>
      %cst_20 = arith.constant -1.000000e+30 : f32
      %45 = vector.broadcast %cst_20 : f32 to vector<16x128xf32>
      %46 = arith.select %44, %36, %45 : vector<16x128xi1>, vector<16x128xf32>
      %cst_21 = arith.constant dense<0xFF800000> : vector<16xf32>
      %47 = vector.multi_reduction <maximumf>, %46, %cst_21 [1] : vector<16x128xf32> to vector<16xf32>
      %48 = vector.shape_cast %47 : vector<16xf32> to vector<16x1xf32>
      %49 = vector.broadcast %42 : vector<16x1xi32> to vector<16x128xi32>
      %50 = arith.cmpi eq, %13, %49 : vector<16x128xi32>
      %cst_22 = arith.constant -1.000000e+30 : f32
      %51 = vector.broadcast %cst_22 : f32 to vector<16x128xf32>
      %52 = arith.select %50, %36, %51 : vector<16x128xi1>, vector<16x128xf32>
      %cst_23 = arith.constant dense<0xFF800000> : vector<16xf32>
      %53 = vector.multi_reduction <maximumf>, %52, %cst_23 [1] : vector<16x128xf32> to vector<16xf32>
      %54 = vector.shape_cast %53 : vector<16xf32> to vector<16x1xf32>
      %c1_i32_24 = arith.constant 1 : i32
      %55 = vector.broadcast %c1_i32_24 : i32 to vector<16x1xi32>
      %56 = arith.cmpi sge, %21, %55 : vector<16x1xi32>
      %cst_25 = arith.constant -1.000000e+30 : f32
      %57 = vector.broadcast %cst_25 : f32 to vector<16x1xf32>
      %58 = arith.select %56, %54, %57 : vector<16x1xi1>, vector<16x1xf32>
      %59 = arith.maximumf %48, %58 : vector<16x1xf32>
      %60 = arith.subf %48, %59 : vector<16x1xf32>
      %61 = math.exp %60 : vector<16x1xf32>
      %62 = arith.subf %58, %59 : vector<16x1xf32>
      %63 = math.exp %62 : vector<16x1xf32>
      %64 = arith.addf %61, %63 : vector<16x1xf32>
      %65 = math.log %64 : vector<16x1xf32>
      %66 = arith.addf %59, %65 : vector<16x1xf32>
      %cst_26 = arith.constant 0.000000e+00 : f32
      %67 = vector.broadcast %cst_26 : f32 to vector<16x1xf32>
      %68 = arith.subf %67, %66 : vector<16x1xf32>
      %cst_27 = arith.constant 1.000000e+29 : f32
      %69 = vector.broadcast %cst_27 : f32 to vector<16x1xf32>
      %70 = arith.cmpf ogt, %68, %69 : vector<16x1xf32>
      %71 = arith.cmpf one, %68, %68 : vector<16x1xf32>
      %72 = arith.ori %70, %71 : vector<16x1xi1>
      %cst_28 = arith.constant 0.000000e+00 : f32
      %73 = vector.broadcast %cst_28 : f32 to vector<16x1xf32>
      %74 = arith.select %72, %73, %68 : vector<16x1xi1>, vector<16x1xf32>
      %c1_i32_29 = arith.constant 1 : i32
      %75 = vector.broadcast %c1_i32_29 : i32 to vector<16x1xi32>
      %76 = arith.cmpi sge, %20, %75 : vector<16x1xi32>
      %cst_30 = arith.constant 0.000000e+00 : f32
      %77 = vector.broadcast %cst_30 : f32 to vector<16x1xf32>
      %78 = arith.select %76, %74, %77 : vector<16x1xi1>, vector<16x1xf32>
      %79 = vector.shape_cast %78 : vector<16x1xf32> to vector<16x1xf32>
      %80 = vector.broadcast %79 : vector<16x1xf32> to vector<16x128xf32>
      %c0_31 = arith.constant 0 : index
      %c0_32 = arith.constant 0 : index
      %81 = vector.load %arg9[%c0_31, %c0_32] : memref<16x128xf32, #tpu.memory_space<vmem>>, vector<16x128xf32>
      tpu.vector_store %arg9[%c0_31, %c0_32], %80 {strides = array<i32>} : memref<16x128xf32, #tpu.memory_space<vmem>>, vector<16x128xf32>,
    } else {
    }
    return
  }
  func.func @transform_0(%arg0: i32, %arg1: i32, %arg2: i32, %arg3: memref<2xi32, #tpu.memory_space<smem>>) -> (i32, i32, i32, i32) {
    %c0_i32 = arith.constant 0 : i32
    %c0_i32_0 = arith.constant 0 : i32
    return %arg0, %c0_i32, %arg1, %arg2 : i32, i32, i32, i32
  }
  func.func @transform_1(%arg0: i32, %arg1: i32, %arg2: i32, %arg3: memref<2xi32, #tpu.memory_space<smem>>) -> (i32, i32) {
    %c0_i32 = arith.constant 0 : i32
    %c0_i32_0 = arith.constant 0 : i32
    return %arg0, %c0_i32 : i32, i32
  }
  func.func @transform_2(%arg0: i32, %arg1: i32, %arg2: i32, %arg3: memref<2xi32, #tpu.memory_space<smem>>) -> (i32, i32) {
    %c0_i32 = arith.constant 0 : i32
    %c0_i32_0 = arith.constant 0 : i32
    return %arg0, %c0_i32 : i32, i32
  }
  func.func @transform_3(%arg0: i32, %arg1: i32, %arg2: i32, %arg3: memref<2xi32, #tpu.memory_space<smem>>) -> (i32, i32) {
    %c0_i32 = arith.constant 0 : i32
    %c0_i32_0 = arith.constant 0 : i32
    return %arg0, %c0_i32 : i32, i32
  }
  func.func @transform_4(%arg0: i32, %arg1: i32, %arg2: i32, %arg3: memref<2xi32, #tpu.memory_space<smem>>) -> (i32, i32) {
    %c0_i32 = arith.constant 0 : i32
    %c0_i32_0 = arith.constant 0 : i32
    return %arg0, %c0_i32 : i32, i32
  }
  func.func @transform_5(%arg0: i32, %arg1: i32, %arg2: i32, %arg3: memref<2xi32, #tpu.memory_space<smem>>) -> (i32, i32) {
    %c0_i32 = arith.constant 0 : i32
    %c0_i32_0 = arith.constant 0 : i32
    return %arg0, %c0_i32 : i32, i32
  }
}

</mosaic_0001>

<bundles_post_ra>
// kernel: tpu_custom_call.1
= control target key start
LH: loop header
LB: loop body
LE: loop exit
PB: predicated region body
PF: predicated region fallthrough
CT: control target
= control target key end

     0   :  { %s4880_s0 = inlined_call_operand.vmem [shape: s32[2], index: 0, kind: input, shape index: {}]   ;;  %s4881_s1 = inlined_call_operand.hbm [shape: f32[2,16,8,16], index: 1, kind: input, shape index: {}]   ;;  %s4882_s2 = inlined_call_operand.vmem [shape: s32[32,128], index: 2, kind: input, shape index: {}]   ;;  %s4883_s3 = inlined_call_operand.vmem [shape: f32[32,128], index: 3, kind: input, shape index: {}]   ;;  %s4884_s4 = inlined_call_operand.vmem [shape: s32[32,1], index: 4, kind: input, shape index: {}]   ;;  %s4885_s5 = inlined_call_operand.vmem [shape: s32[32,1], index: 5, kind: input, shape index: {}]   ;;  %s4886_s6 = inlined_call_operand.hbm [shape: f32[32,128], index: 6, kind: output, shape index: {}]  }
   0x1   :  { %s11_s23 = sshll.u32 %s4880_s0, 4  ;;  %s12_s23 = int_to_ptr.vmem [resolvable:$true] %s11_s23 }
   0x2   :  { %s3673_s24 = scalar_lea.vmem %s12_s23, 16  ;;  %p3678_p1 = scmp.lt.s32.totalorder %s12_s23, %s12_s23 }
   0x3   :  { %p3674_p0 = scmp.ne.s32.totalorder %s12_s23, %s3673_s24  ;;  %p3679_p2 = scmp.lt.s32.totalorder %s3673_s24, %s3673_s24 }
   0x5   :  { %p3680_p3 = por %p3679_p2, %p3678_p1 }
   0x7   :  { %p3681_p4 = pnand %p3680_p3, %p3674_p0 }
   0x9   :  { %3684 = shalt.err (!%p3681_p4)  }
   0xa   :  { %s3837_s25 = smov [#allocation7]  }
   0xb   :  { %14 = dma.vmem_to_smem %s12_s23, 16, %s3837_s25, [#allocation6] }
   0xc   :  { %3783 = dma.done.wait [#allocation6], 16 }
   0xd   :  { %3784 = vsyncadd [#allocation6], 4294967280 }
   0xe   :  { %16 = sfence }
   0xf   :  { %17 = vsyncpa [#allocation9], 0 }
  0x10   :  { %19 = vsyncpa [#allocation9 + $0x1], 0 }
  0x11   :  { %20 = vsyncpa [#allocation10], 0 }
  0x12   :  { %22 = vsyncpa [#allocation10 + $0x1], 0  ;;  %s3893_s26 = smov 0   ;;  %s3895_s0 = smov 0  }
  0x13   :  { %s3897_s27 = smov 0   ;;  %s3899_s28 = smov 0  }
  0x14   :  { %s3901_s29 = smov 0   ;;  %s3903_s30 = smov 0  }
  0x15 LB: > { %s3153_s7 = sadd.s32 4294967295, %s3815_s30   ;;  %s3154_s8 = sadd.s32 4294967294, %s3815_s30   ;;  %s3815_s30 = sphi %s3903_s30, %s28_s30   ;;  %s3811_s29 = sphi %s3901_s29, %s4944_s29   ;;  %s3807_s28 = sphi %s3899_s28, %s4943_s28   ;;  %s3803_s27 = sphi %s3897_s27, %s4942_s27   ;;  %s3799_s0 = sphi %s3895_s0, %s4941_s0   ;;  %s3795_s26 = sphi %s3893_s26, %s4940_s26  }
  0x16   : > { %s47_s9 = sadd.s32 1, %s3811_s29  ;;  %s58_s10 = sadd.s32 1, %s3803_s27 }
  0x17   : > { %p49_p5 = scmp.ge.s32.totalorder %s47_s9, 2  ;;  %p65_p6 = scmp.ne.s32.totalorder %s3803_s27, %s3799_s0 }
  0x18   : > { %p66_p7 = scmp.eq.s32.totalorder %s3815_s30, 0  ;;  %p71_p8 = scmp.ne.s32.totalorder %s3799_s0, %s3795_s26 }
  0x19   : > { %s4946_s9 = smov (%p49_p5, %s47_s9), 0  ;;  %p72_p10 = scmp.eq.s32.totalorder %s3153_s7, 0 }
  0x1a   : > { %p3934_p9 = por %p66_p7, %p65_p6  ;;  %s51_s12 = ssub.s32 %s3811_s29, %s4946_s9 }
  0x1b   : > { %p199_p11 = scmp.eq.s32.totalorder %s3153_s7, 1  ;;  %p56_p12 = scmp.eq.s32.totalorder %s51_s12, 0 }
  0x1c   : > { %p3940_p13 = por %p72_p10, %p71_p8  ;;  %p205_p1 = scmp.eq.s32.totalorder %s3154_s8, 1 }
  0x1d   : > { %p3944_p0 = por %p199_p11, %p65_p6  ;;  %p3435_p4 = scmp.lt.s32.totalorder %s3815_s30, 2 }
  0x1e   : > { %s3949_s15 = scalar_select %p56_p12, %s3803_s27, %s58_s10  }
  0x1f   : > { %p3951_p2 = por %p205_p1, %p71_p8  ;;  %s225_s17 = sand.u32 1, %s3803_s27  }
  0x20   : > { %s3157_s18 = sshll.u32 %s225_s17, 7  ;;  %s3261_s19 = sshll.u32 %s3811_s29, 11 }
  0x21   : > { %s237_s22 = scalar_lea.hbm %s4881_s1, %s3261_s19  ;;  %s229_s23 = scalar_lea.vmem [#allocation8], %s3157_s18 }
  0x22   : > { %s238_s24 = sshll.u32 %s229_s23, 4  ;;  %p3964_p5 = pnand %p3435_p4, %p3934_p9  ;;  %s239_s24 = int_to_ptr.vmem [resolvable:$true] %s238_s24 }
  0x23   : > { %p3160_p6 = scmp.ge.s32.totalorder %s3815_s30, 1  ;;  %s226_s7 = scalar_lea.sflag [#allocation9], %s225_s17 }
  0x24   : > { %p3687_p7 = pneg %p3964_p5  ;;  %s3698_s8 = scalar_lea.vmem %s239_s24, 2048 }
  0x25   : > { %p3699_p8 = scmp.ne.s32.totalorder %s239_s24, %s3698_s8  ;;  %s3838_s10 = smov [#allocation8]  }
  0x26   : > { %s3703_s12 = sshll.u32 %s3838_s10, 4  ;;  %s3704_s12 = int_to_ptr.vmem [resolvable:$false] %s3703_s12 }
  0x27   : > { %p3701_p10 = pnand %p3699_p8, %p3687_p7  ;;  %s3705_s18 = scalar_lea.vmem %s3704_s12, 4096 }
  0x28   : > { %p3706_p12 = scmp.lt.s32.totalorder %s239_s24, %s3704_s12  ;;  %p3707_p1 = scmp.lt.s32.totalorder %s3705_s18, %s3698_s8 }
  0x29   : > { %p3702_p11 = pneg %p3701_p10 }
  0x2a   : > { %p3708_p3 = por %p3707_p1, %p3706_p12 }
  0x2c   : > { %p3709_p9 = pnand %p3708_p3, %p3702_p11 }
  0x2e   : > { %3712 = shalt.err (!%p3709_p9)
}
  0x2f   : > { %s3839_s11 = smov 128   ;;  %s3840_s17 = smov 8  }
  0x30   : > { %3430 = dma.hbm_to_vmem [thread:$0]  (!%p3964_p5), %s237_s22, 2048, %s239_s24, %s226_s7, %s3839_s11, %s3839_s11, %s3840_s17  }
  0x31   : > { %p282_p4 = scmp.lt.s32.totalorder %s3815_s30, 3 }
  0x33   : > { %p283_p7 = pnand %p3160_p6, %p282_p4 }
  0x35   : > { %286 = sbr.rel (%p283_p7) target bundleno = 1334 (0x536), region = 40 }
  0x3a   : > { %s3977_s19 = sand.u32 1, %s3799_s0  }
  0x3b   : > { %s3161_s20 = sshll.u32 %s3977_s19, 7  ;;  %s289_s21 = scalar_lea.sflag [#allocation9], %s3977_s19 }
  0x3c   : > { %s3981_s23 = scalar_lea.vmem [#allocation8], %s3161_s20 }
  0x3d   : > { %3786 = dma.done.wait (%p3940_p13), %s289_s21, 2048  }
  0x3e   : > { %3788 = vsyncadd (%p3940_p13), %s289_s21, 4294965248  ;;  %vm392_vm0 = vcmask 7168   ;;  %s3988_s22 = sld [smem:[#allocation7 + %s3807_s28]]  ;;  %v4887_v0 = vmov -1e+30   ;;  %vm441_vm1 = vcmask 130048  }
  0x3f   : > { %395 = vst.msk [vmem:[#allocation4 + $0x10] sm:$0xff] %vm392_vm0, %v4887_v0  ;;  %393 = vst.msk [vmem:[#allocation4] sm:$0xff] %vm392_vm0, %v4887_v0  ;;  %v4023_v1 = vld [vmem:[%s3981_s23 + $0x10] sm:$0xff]  ;;  %v4026_v2 = vld [vmem:[%s3981_s23] sm:$0xff]  ;;  %v4888_v21 = vmov 0   ;;  %v4892_v32 = vmov 0.0  }
  0x40   : > { %394 = vst.msk [vmem:[#allocation4 + $0x8] sm:$0xff] %vm392_vm0, %v4887_v0  ;;  %396 = vst.msk [vmem:[#allocation4 + $0x18] sm:$0xff] %vm392_vm0, %v4887_v0  ;;  %v4029_v3 = vld [vmem:[%s3981_s23 + $0x18] sm:$0xff]  ;;  %v448_v4 = vsel %vm441_vm1, %v4023_v1, -inf  ;;  %v442_v5 = vsel %vm441_vm1, %v4026_v2, -inf  ;;  %v4036_v6 = vld [vmem:[%s3981_s23 + $0x8] sm:$0xff]  ;;  %3541 = vset.pattern.permute.xlu0 %v4888_v21  ;;  %3542 = vset.pattern.permute.xlu1 %v4888_v21 }
  0x41   : > { %397 = vst.msk [vmem:[#allocation4 + $0x20] sm:$0xff] %vm392_vm0, %v4887_v0  ;;  %398 = vst.msk [vmem:[#allocation4 + $0x28] sm:$0xff] %vm392_vm0, %v4887_v0  ;;  %449 = vmax.xlane.f32.xlu1 %v448_v4  ;;  %443 = vmax.xlane.f32.xlu0 %v442_v5  ;;  %v451_v7 = vsel %vm441_vm1, %v4029_v3, -inf  ;;  %v445_v8 = vsel %vm441_vm1, %v4036_v6, -inf  ;;  %v4043_v9 = vld [vmem:[%s3981_s23 + $0x28] sm:$0xff]  ;;  %v4046_v10 = vld [vmem:[%s3981_s23 + $0x20] sm:$0xff] }
  0x42   : > { %399 = vst.msk [vmem:[#allocation4 + $0x30] sm:$0xff] %vm392_vm0, %v4887_v0  ;;  %400 = vst.msk [vmem:[#allocation4 + $0x38] sm:$0xff] %vm392_vm0, %v4887_v0  ;;  %v457_v11 = vsel %vm441_vm1, %v4043_v9, -inf  ;;  %v454_v12 = vsel %vm441_vm1, %v4046_v10, -inf  ;;  %v4053_v13 = vld [vmem:[%s3981_s23 + $0x38] sm:$0xff]  ;;  %v4056_v14 = vld [vmem:[%s3981_s23 + $0x30] sm:$0xff]  ;;  %3311 = vmatprep.subr.mxu0 %v4892_v32  ;;  %3318 = vmatprep.subr.mxu1 %v4892_v32 }
  0x43   : > { %401 = vst.msk [vmem:[#allocation4 + $0x40] sm:$0xff] %vm392_vm0, %v4887_v0  ;;  %402 = vst.msk [vmem:[#allocation4 + $0x48] sm:$0xff] %vm392_vm0, %v4887_v0  ;;  %v463_v15 = vsel %vm441_vm1, %v4053_v13, -inf  ;;  %v460_v16 = vsel %vm441_vm1, %v4056_v14, -inf  ;;  %v4063_v17 = vld [vmem:[%s3981_s23 + $0x48] sm:$0xff]  ;;  %v4066_v18 = vld [vmem:[%s3981_s23 + $0x40] sm:$0xff] }
  0x44   : > { %403 = vst.msk [vmem:[#allocation4 + $0x50] sm:$0xff] %vm392_vm0, %v4887_v0  ;;  %404 = vst.msk [vmem:[#allocation4 + $0x58] sm:$0xff] %vm392_vm0, %v4887_v0  ;;  %v469_v19 = vsel %vm441_vm1, %v4063_v17, -inf  ;;  %v466_v20 = vsel %vm441_vm1, %v4066_v18, -inf  ;;  %v4075_v22 = vld [vmem:[%s3981_s23 + $0x58] sm:$0xff]  ;;  %v4078_v23 = vld [vmem:[%s3981_s23 + $0x50] sm:$0xff] }
  0x45   : > { %405 = vst.msk [vmem:[#allocation4 + $0x60] sm:$0xff] %vm392_vm0, %v4887_v0  ;;  %406 = vst.msk [vmem:[#allocation4 + $0x68] sm:$0xff] %vm392_vm0, %v4887_v0  ;;  %452 = vmax.xlane.f32.xlu1 %v451_v7  ;;  %446 = vmax.xlane.f32.xlu0 %v445_v8  ;;  %v475_v24 = vsel %vm441_vm1, %v4075_v22, -inf  ;;  %v472_v25 = vsel %vm441_vm1, %v4078_v23, -inf  ;;  %v4085_v26 = vld [vmem:[%s3981_s23 + $0x68] sm:$0xff]  ;;  %v4088_v27 = vld [vmem:[%s3981_s23 + $0x60] sm:$0xff] }
  0x46   : > { %407 = vst.msk [vmem:[#allocation4 + $0x70] sm:$0xff] %vm392_vm0, %v4887_v0  ;;  %408 = vst.msk [vmem:[#allocation4 + $0x78] sm:$0xff] %vm392_vm0, %v4887_v0  ;;  %v481_v28 = vsel %vm441_vm1, %v4085_v26, -inf  ;;  %v478_v29 = vsel %vm441_vm1, %v4088_v27, -inf  ;;  %v4095_v30 = vld [vmem:[%s3981_s23 + $0x78] sm:$0xff]  ;;  %v4098_v31 = vld [vmem:[%s3981_s23 + $0x70] sm:$0xff] }
  0x47   : > { %409 = vst.msk [vmem:[#allocation5] sm:$0xff] %vm392_vm0, %v4892_v32  ;;  %410 = vst.msk [vmem:[#allocation5 + $0x8] sm:$0xff] %vm392_vm0, %v4892_v32  ;;  %v487_v33 = vsel %vm441_vm1, %v4095_v30, -inf  ;;  %v484_v34 = vsel %vm441_vm1, %v4098_v31, -inf  ;;  %v4138_v35 = vld [vmem:[#allocation4 + $0x10] sm:$0xff]  ;;  %v4140_v36 = vld [vmem:[#allocation4] sm:$0xff] }
  0x48   : > { %411 = vst.msk [vmem:[#allocation5 + $0x10] sm:$0xff] %vm392_vm0, %v4892_v32  ;;  %412 = vst.msk [vmem:[#allocation5 + $0x18] sm:$0xff] %vm392_vm0, %v4892_v32  ;;  %v4148_v41 = vld [vmem:[#allocation4 + $0x18] sm:$0xff]  ;;  %v4150_v42 = vld [vmem:[#allocation4 + $0x8] sm:$0xff]  ;;  %s3162_s13 = sshll.u32 %s3977_s19, 4  ;;  %s3163_s24 = sshll.u32 %s3807_s28, 1 }
  0x49   : > { %458 = vmax.xlane.f32.xlu1 %v457_v11  ;;  %455 = vmax.xlane.f32.xlu0 %v454_v12  ;;  %413 = vst.msk [vmem:[#allocation5 + $0x20] sm:$0xff] %vm392_vm0, %v4892_v32  ;;  %414 = vst.msk [vmem:[#allocation5 + $0x28] sm:$0xff] %vm392_vm0, %v4892_v32  ;;  %v4167_v49 = vld [vmem:[#allocation4 + $0x28] sm:$0xff]  ;;  %v4169_v50 = vld [vmem:[#allocation4 + $0x20] sm:$0xff]  ;;  %p340_p13 = scmp.lt.s32.totalorder %s3163_s24, 3  ;;  %vm3845_vm2 = vmmov 0  }
  0x4a   : > { %415 = vst.msk [vmem:[#allocation5 + $0x30] sm:$0xff] %vm392_vm0, %v4892_v32  ;;  %416 = vst.msk [vmem:[#allocation5 + $0x38] sm:$0xff] %vm392_vm0, %v4892_v32  ;;  %v4186_v57 = vld [vmem:[#allocation4 + $0x38] sm:$0xff]  ;;  %v4188_v58 = vld [vmem:[#allocation4 + $0x30] sm:$0xff]  ;;  %3315 = vmatprep.mubr.msk.f32.mxu0 %vm3845_vm2, %v4892_v32  ;;  %3322 = vmatprep.mubr.msk.f32.mxu1 %vm3845_vm2, %v4892_v32  ;;  %p3252_p3 = scmp.le.s32.totalorder %s3988_s22, 1 }
  0x4b   : > { %417 = vst.msk [vmem:[#allocation5 + $0x40] sm:$0xff] %vm392_vm0, %v4892_v32  ;;  %418 = vst.msk [vmem:[#allocation5 + $0x48] sm:$0xff] %vm392_vm0, %v4892_v32  ;;  %v4205_v5 = vld [vmem:[#allocation4 + $0x48] sm:$0xff]  ;;  %v4207_v7 = vld [vmem:[#allocation4 + $0x40] sm:$0xff]  ;;  %s4948_s24 = smov (!%p340_p13, %s3163_s24), 3  ;;  %s4766_s8 = smov (!%p3252_p3), 1  }
  0x4c   : > { %419 = vst.msk [vmem:[#allocation5 + $0x50] sm:$0xff] %vm392_vm0, %v4892_v32  ;;  %420 = vst.msk [vmem:[#allocation5 + $0x58] sm:$0xff] %vm392_vm0, %v4892_v32  ;;  %s4307_s25 = sshll.u32 %s4948_s24, 3 }
  0x4d   : > { %464 = vmax.xlane.f32.xlu1 %v463_v15  ;;  %461 = vmax.xlane.f32.xlu0 %v460_v16  ;;  %421 = vst.msk [vmem:[#allocation5 + $0x60] sm:$0xff] %vm392_vm0, %v4892_v32  ;;  %422 = vst.msk [vmem:[#allocation5 + $0x68] sm:$0xff] %vm392_vm0, %v4892_v32  ;;  %s4316_s10 = scalar_lea.vmem %s4882_s2, %s4307_s25  ;;  %s349_s11 = scalar_lea.vmem %s4883_s3, %s4307_s25 }
  0x4e   : > { %423 = vst.msk [vmem:[#allocation5 + $0x70] sm:$0xff] %vm392_vm0, %v4892_v32  ;;  %424 = vst.msk [vmem:[#allocation5 + $0x78] sm:$0xff] %vm392_vm0, %v4892_v32  ;;  %s355_s21 = scalar_lea.vmem %s4884_s4, %s4307_s25  ;;  %v4333_v8 = vld [vmem:[%s349_s11 + $0x8] sm:$0xff]  ;;  %s361_s7 = scalar_lea.vmem %s4885_s5, %s4307_s25 }
  0x4f   : > { %4902 = vst [vmem:[#allocation17_spill] sm:$0xff] %v4333_v8  ;;  %v4335_v11 = vld [vmem:[%s355_s21] sm:$0xff]  ;;  %v4337_v59 = vld [vmem:[%s355_s21 + $0x8] sm:$0xff]  ;;  %s4755_s25 = scalar_lea.vmem [#allocation11], %s3162_s13 }
  0x50   : > { %4903 = vst [vmem:[#allocation18_spill] sm:$0xff] %v4335_v11  ;;  %4904 = vst [vmem:[#allocation19_spill] sm:$0xff] %v4337_v59  ;;  %v3846_v11 = vmov 1.0  }
  0x51   : > { %470 = vmax.xlane.f32.xlu1 %v469_v19  ;;  %467 = vmax.xlane.f32.xlu0 %v466_v20  ;;  %v4224_v20 = vld [vmem:[#allocation4 + $0x58] sm:$0xff] }
  0x55   : > { %476 = vmax.xlane.f32.xlu1 %v475_v24  ;;  %473 = vmax.xlane.f32.xlu0 %v472_v25  ;;  %v4226_v24 = vld [vmem:[#allocation4 + $0x50] sm:$0xff] }
  0x59   : > { %482 = vmax.xlane.f32.xlu1 %v481_v28  ;;  %479 = vmax.xlane.f32.xlu0 %v478_v29 }
  0x5d   : > { %488 = vmax.xlane.f32.xlu1 %v487_v33  ;;  %485 = vmax.xlane.f32.xlu0 %v484_v34 }
  0xca   : > { %v450_v37 = vpop.xlane.xlu1 %449  ;;  %v444_v38 = vpop.xlane.xlu0 %443 }
  0xcb   : > { %v4143_v39 = vmax.f32 %v4138_v35, %v450_v37  ;;  %v4146_v40 = vmax.f32 %v4140_v36, %v444_v38  ;;  %v4244_v38 = vld [vmem:[#allocation4 + $0x68] sm:$0xff] }
  0xcd   : > { %813 = vst.msk [vmem:[#allocation4 + $0x10] sm:$0xff] %vm392_vm0, %v4143_v39  ;;  %811 = vst.msk [vmem:[#allocation4] sm:$0xff] %vm392_vm0, %v4146_v40  ;;  %604 = vperm.xlu0 %3541, %v4146_v40  }
  0xce   : > { %v453_v45 = vpop.xlane.xlu1 %452  ;;  %v447_v46 = vpop.xlane.xlu0 %446 }
  0xcf   : > { %v4162_v47 = vmax.f32 %v4148_v41, %v453_v45  ;;  %v4165_v48 = vmax.f32 %v4150_v42, %v447_v46  ;;  %v4246_v45 = vld [vmem:[#allocation4 + $0x60] sm:$0xff] }
  0xd1   : > { %814 = vst.msk [vmem:[#allocation4 + $0x18] sm:$0xff] %vm392_vm0, %v4162_v47  ;;  %812 = vst.msk [vmem:[#allocation4 + $0x8] sm:$0xff] %vm392_vm0, %v4165_v48  ;;  %609 = vperm.xlu1 %3542, %v4165_v48  }
  0xd2   : > { %v459_v53 = vpop.xlane.xlu1 %458  ;;  %v456_v54 = vpop.xlane.xlu0 %455 }
  0xd3   : > { %v4181_v55 = vmax.f32 %v4167_v49, %v459_v53  ;;  %v4184_v56 = vmax.f32 %v4169_v50, %v456_v54 }
  0xd5   : > { %816 = vst.msk [vmem:[#allocation4 + $0x28] sm:$0xff] %vm392_vm0, %v4181_v55  ;;  %614 = vperm.xlu1 %3542, %v4143_v39   ;;  %815 = vst.msk [vmem:[#allocation4 + $0x20] sm:$0xff] %vm392_vm0, %v4184_v56 }
  0xd6   : > { %v465_v61 = vpop.xlane.xlu1 %464  ;;  %v462_v62 = vpop.xlane.xlu0 %461 }
  0xd7   : > { %v4200_v63 = vmax.f32 %v4186_v57, %v465_v61  ;;  %v4203_v4 = vmax.f32 %v4188_v58, %v462_v62 }
  0xd9   : > { %818 = vst.msk [vmem:[#allocation4 + $0x38] sm:$0xff] %vm392_vm0, %v4200_v63  ;;  %619 = vperm.xlu1 %3542, %v4162_v47   ;;  %817 = vst.msk [vmem:[#allocation4 + $0x30] sm:$0xff] %vm392_vm0, %v4203_v4 }
  0xda   : > { %v471_v12 = vpop.xlane.xlu1 %470  ;;  %v468_v15 = vpop.xlane.xlu0 %467 }
  0xdb   : > { %v4219_v16 = vmax.f32 %v4205_v5, %v471_v12  ;;  %v4222_v19 = vmax.f32 %v4207_v7, %v468_v15  ;;  %v4264_v15 = vld [vmem:[#allocation4 + $0x78] sm:$0xff] }
  0xdd   : > { %820 = vst.msk [vmem:[#allocation4 + $0x48] sm:$0xff] %vm392_vm0, %v4219_v16  ;;  %649 = vperm.xlu0 %3541, %v4219_v16   ;;  %624 = vperm.xlu1 %3542, %v4184_v56   ;;  %819 = vst.msk [vmem:[#allocation4 + $0x40] sm:$0xff] %vm392_vm0, %v4222_v19 }
  0xde   : > { %v477_v29 = vpop.xlane.xlu1 %476  ;;  %v474_v33 = vpop.xlane.xlu0 %473 }
  0xdf   : > { %v4239_v34 = vmax.f32 %v4224_v20, %v477_v29  ;;  %v4242_v37 = vmax.f32 %v4226_v24, %v474_v33  ;;  %v4266_v29 = vld [vmem:[#allocation4 + $0x70] sm:$0xff] }
  0xe1   : > { %822 = vst.msk [vmem:[#allocation4 + $0x58] sm:$0xff] %vm392_vm0, %v4239_v34  ;;  %659 = vperm.xlu0 %3541, %v4239_v34   ;;  %629 = vperm.xlu1 %3542, %v4181_v55   ;;  %821 = vst.msk [vmem:[#allocation4 + $0x50] sm:$0xff] %vm392_vm0, %v4242_v37 }
  0xe2   : > { %v483_v54 = vpop.xlane.xlu1 %482  ;;  %v480_v61 = vpop.xlane.xlu0 %479 }
  0xe3   : > { %v4259_v62 = vmax.f32 %v4244_v38, %v483_v54  ;;  %v4262_v12 = vmax.f32 %v4246_v45, %v480_v61 }
  0xe5   : > { %824 = vst.msk [vmem:[#allocation4 + $0x68] sm:$0xff] %vm392_vm0, %v4259_v62  ;;  %669 = vperm.xlu0 %3541, %v4259_v62   ;;  %634 = vperm.xlu1 %3542, %v4203_v4   ;;  %823 = vst.msk [vmem:[#allocation4 + $0x60] sm:$0xff] %vm392_vm0, %v4262_v12 }
  0xe6   : > { %v489_v61 = vpop.xlane.xlu1 %488  ;;  %v486_v0 = vpop.xlane.xlu0 %485 }
  0xe7   : > { %v4279_v21 = vmax.f32 %v4264_v15, %v489_v61  ;;  %v4282_v33 = vmax.f32 %v4266_v29, %v486_v0  ;;  %v4891_v0 = vlaneseq  ;;  %v3844_v61 = vmov 1966171168  }
  0xe8   : > { %v838_v53 = vunpack.c.l.s4 %v3844_v61  ;;  %v4327_v61 = vld [vmem:[%s349_s11] sm:$0xff] }
  0xe9   : > { %4900 = vst [vmem:[#allocation15_spill] sm:$0xff] %v4282_v33  ;;  %826 = vst.msk [vmem:[#allocation4 + $0x78] sm:$0xff] %vm392_vm0, %v4279_v21  ;;  %679 = vperm.xlu0 %3541, %v4279_v21   ;;  %639 = vperm.xlu1 %3542, %v4200_v63   ;;  %v4305_v54 = vshrl.u32 %v4891_v0, 7 }
  0xea   : > { %825 = vst.msk [vmem:[#allocation4 + $0x70] sm:$0xff] %vm392_vm0, %v4282_v33  ;;  %v839_v46 = vunpack.c.0.s8 %v838_v53  ;;  %v827_v53 = vld [vmem:[%s4316_s10] sm:$0xff]  ;;  %4901 = vst [vmem:[#allocation16_spill] sm:$0xff] %v4327_v61 }
  0xeb   : > { %v836_v0 = vcombine.high %v827_v53, %v827_v53  ;;  %v4331_v25 = vsub.s32 0, %v4305_v54  ;;  %v4340_v60 = vadd.s32 8, %v4305_v54 }
  0xec   : > { %v4310_v28 = vsub.s32 %v839_v46, %v4305_v54 }
  0xed   : > { %644 = vperm.xlu1 %3542, %v4222_v19  }
  0xee   : > { %v843_v46 = vrot.slane %v827_v53, %v4310_v28  ;;  %v850_v52 = vrot.slane %v836_v0, %v4310_v28 }
  0xf0   : > { %v859_v51 = vrot.slane %v843_v46, %v4310_v28  ;;  %v851_v43 = vcombine.high %v843_v46, %v843_v46  ;;  %v852_v61 = vcombine.high %v850_v52, %v850_v52  ;;  %v866_v0 = vrot.slane %v850_v52, %v4310_v28 }
  0xf1   : > { %654 = vperm.xlu1 %3542, %v4242_v37  }
  0xf2   : > { %v881_v44 = vcombine.high %v859_v51, %v859_v51  ;;  %v937_v53 = vrot.slane %v859_v51, %v4331_v25  ;;  %v873_v32 = vrot.slane %v851_v43, %v4310_v28  ;;  %v828_v51 = vld [vmem:[%s4316_s10 + $0x8] sm:$0xff] }
  0xf3   : > { %v892_v52 = vrot.slane %v828_v51, %v4310_v28 }
  0xf4   : > { %vm999_vm3 = vcmp.eq.s32.totalorder %v4340_v60, %v937_v53  ;;  %vm998_vm4 = vcmp.eq.s32.totalorder %v4305_v54, %v937_v53  ;;  %v883_v8 = vcombine.high %v873_v32, %v873_v32  ;;  %v941_v59 = vrot.slane %v873_v32, %v4331_v25 }
  0xf5   : > { %664 = vperm.xlu1 %3542, %v4262_v12   ;;  %3312 = vmatpush3.msk.msra.mxu0 %vm999_vm3, %v3846_v11  ;;  %v945_v46 = vrot.slane %v881_v44, %v4331_v25  ;;  %v880_v32 = vrot.slane %v852_v61, %v4310_v28  ;;  %v953_v44 = vrot.slane %v866_v0, %v4331_v25 }
  0xf6   : > { %vm1001_vm5 = vcmp.eq.s32.totalorder %v4340_v60, %v941_v59  ;;  %vm1000_vm6 = vcmp.eq.s32.totalorder %v4305_v54, %v941_v59  ;;  %v949_v43 = vrot.slane %v883_v8, %v4331_v25  ;;  %v882_v59 = vcombine.high %v866_v0, %v866_v0 }
  0xf7   : > { %3319 = vmatpush3.msk.msra.mxu1 %vm1001_vm5, %v3846_v11  ;;  %vm1003_vm7 = vcmp.eq.s32.totalorder %v4340_v60, %v945_v46  ;;  %vm1002_vm8 = vcmp.eq.s32.totalorder %v4305_v54, %v945_v46  ;;  %v957_v8 = vrot.slane %v880_v32, %v4331_v25  ;;  %vm1007_vm11 = vcmp.eq.s32.totalorder %v4340_v60, %v953_v44 }
  0xf8   : > { %vm1005_vm9 = vcmp.eq.s32.totalorder %v4340_v60, %v949_v43  ;;  %vm1004_vm10 = vcmp.eq.s32.totalorder %v4305_v54, %v949_v43  ;;  %v884_v61 = vcombine.high %v880_v32, %v880_v32  ;;  %v900_v53 = vcombine.high %v892_v52, %v892_v52 }
  0xf9   : > { %674 = vperm.xlu1 %3542, %v4282_v33   ;;  %v4905_v33 = vmov 0.0   ;;  %vm1006_vm12 = vcmp.eq.s32.totalorder %v4305_v54, %v953_v44  ;;  %v961_v46 = vrot.slane %v882_v59, %v4331_v25  ;;  %vm1009_vm13 = vcmp.eq.s32.totalorder %v4340_v60, %v957_v8 }
  0xfa   : > { %3313 = vmatprep.subr.mxu0 %v4905_v33  ;;  %3320 = vmatprep.subr.mxu1 %v4905_v33  ;;  %v885_v0 = vcombine.high %v828_v51, %v828_v51  ;;  %v908_v43 = vrot.slane %v892_v52, %v4310_v28  ;;  %vm1008_vm14 = vcmp.eq.s32.totalorder %v4305_v54, %v957_v8 }
  0xfb   : > { %3314 = vmatpush3.msk.msra.mxu0 %vm998_vm4, %v3846_v11  ;;  %3321 = vmatpush3.msk.msra.mxu1 %vm1000_vm6, %v3846_v11  ;;  %v965_v32 = vrot.slane %v884_v61, %v4331_v25  ;;  %v922_v44 = vrot.slane %v900_v53, %v4310_v28  ;;  %vm1011_vm15 = vcmp.eq.s32.totalorder %v4340_v60, %v961_v46 }
  0xfc   : > { %3316 = vmatmul.mubr.msk.f32.vlgmr.msra.gmra.mxu0 %vm441_vm1, %v4026_v2  ;;  %3325 = vmatprep.subr.mxu0 %v4905_v33  ;;  %vm1010_vm3 = vcmp.eq.s32.totalorder %v4305_v54, %v961_v46  ;;  %v899_v51 = vrot.slane %v885_v0, %v4310_v28  ;;  %v969_v52 = vrot.slane %v908_v43, %v4331_v25 }
  0xfd   : > { %3323 = vmatmul.mubr.msk.f32.vlgmr.msra.gmra.mxu1 %vm441_vm1, %v4036_v6  ;;  %3326 = vmatpush3.msk.msra.mxu0 %vm1003_vm7, %v3846_v11  ;;  %vm1013_vm4 = vcmp.eq.s32.totalorder %v4340_v60, %v965_v32  ;;  %v973_v59 = vrot.slane %v922_v44, %v4331_v25  ;;  %vm1012_vm5 = vcmp.eq.s32.totalorder %v4305_v54, %v965_v32 }
  0xfe   : > { %3327 = vmatprep.subr.mxu0 %v4905_v33  ;;  %3329 = vmatprep.mubr.msk.f32.mxu0 %vm3845_vm2, %v4905_v33  ;;  %v930_v8 = vcombine.high %v908_v43, %v908_v43  ;;  %v932_v61 = vcombine.high %v922_v44, %v922_v44  ;;  %vm1015_vm6 = vcmp.eq.s32.totalorder %v4340_v60, %v969_v52 }
  0xff   : > { %3328 = vmatpush3.msk.msra.mxu0 %vm1002_vm8, %v3846_v11  ;;  %3332 = vmatprep.subr.mxu1 %v4905_v33  ;;  %vm1017_vm7 = vcmp.eq.s32.totalorder %v4340_v60, %v973_v59  ;;  %v901_v53 = vcombine.high %v899_v51, %v899_v51  ;;  %vm1014_vm8 = vcmp.eq.s32.totalorder %v4305_v54, %v969_v52 }
 0x100   : > { %3330 = vmatmul.mubr.msk.f32.vlgmr.msra.gmra.mxu0 %vm441_vm1, %v4023_v1  ;;  %3333 = vmatpush3.msk.msra.mxu1 %vm1005_vm9, %v3846_v11  ;;  %v977_v46 = vrot.slane %v930_v8, %v4331_v25  ;;  %v981_v0 = vrot.slane %v932_v61, %v4331_v25  ;;  %vm1016_vm9 = vcmp.eq.s32.totalorder %v4305_v54, %v973_v59 }
 0x101   : > { %3334 = vmatprep.subr.mxu1 %v4905_v33  ;;  %3336 = vmatprep.mubr.msk.f32.mxu1 %vm3845_vm2, %v4905_v33  ;;  %v915_v43 = vrot.slane %v899_v51, %v4310_v28  ;;  %v929_v32 = vrot.slane %v901_v53, %v4310_v28 }
 0x102   : > { %3335 = vmatpush3.msk.msra.mxu1 %vm1004_vm10, %v3846_v11  ;;  %3339 = vmatprep.subr.mxu0 %v4905_v33  ;;  %vm1019_vm10 = vcmp.eq.s32.totalorder %v4340_v60, %v977_v46 }
 0x103   : > { %3337 = vmatmul.mubr.msk.f32.vlgmr.msra.gmra.mxu1 %vm441_vm1, %v4029_v3  ;;  %3340 = vmatpush3.msk.msra.mxu0 %vm1007_vm11, %v3846_v11  ;;  %vm1021_vm11 = vcmp.eq.s32.totalorder %v4340_v60, %v981_v0  ;;  %v985_v28 = vrot.slane %v915_v43, %v4331_v25  ;;  %v989_v44 = vrot.slane %v929_v32, %v4331_v25 }
 0x104   : > { %3341 = vmatprep.subr.mxu0 %v4905_v33  ;;  %3343 = vmatprep.mubr.msk.f32.mxu0 %vm3845_vm2, %v4905_v33  ;;  %v931_v51 = vcombine.high %v915_v43, %v915_v43  ;;  %v933_v52 = vcombine.high %v929_v32, %v929_v32 }
 0x105   : > { %3342 = vmatpush3.msk.msra.mxu0 %vm1006_vm12, %v3846_v11  ;;  %3346 = vmatprep.subr.mxu1 %v4905_v33  ;;  %vm1018_vm12 = vcmp.eq.s32.totalorder %v4305_v54, %v977_v46 }
 0x106   : > { %3344 = vmatmul.mubr.msk.f32.vlgmr.msra.gmra.mxu0 %vm441_vm1, %v4046_v10  ;;  %3347 = vmatpush3.msk.msra.mxu1 %vm1009_vm13, %v3846_v11  ;;  %vm1020_vm13 = vcmp.eq.s32.totalorder %v4305_v54, %v981_v0  ;;  %v4488_v59 = vrot.slane %v931_v51, %v4331_v25  ;;  %v4491_v8 = vrot.slane %v933_v52, %v4331_v25 }
 0x107   : > { %3348 = vmatprep.subr.mxu1 %v4905_v33  ;;  %3350 = vmatprep.mubr.msk.f32.mxu1 %vm3845_vm2, %v4905_v33 }
 0x108   : > { %3349 = vmatpush3.msk.msra.mxu1 %vm1008_vm14, %v3846_v11  ;;  %3353 = vmatprep.subr.mxu0 %v4905_v33  ;;  %vm1023_vm14 = vcmp.eq.s32.totalorder %v4340_v60, %v985_v28 }
 0x109   : > { %3351 = vmatmul.mubr.msk.f32.vlgmr.msra.gmra.mxu1 %vm441_vm1, %v4043_v9  ;;  %3354 = vmatpush3.msk.msra.mxu0 %vm1011_vm15, %v3846_v11  ;;  %vm1025_vm15 = vcmp.eq.s32.totalorder %v4340_v60, %v989_v44 }
 0x10a   : > { %3355 = vmatprep.subr.mxu0 %v4905_v33  ;;  %3360 = vmatprep.subr.mxu1 %v4905_v33 }
 0x10b   : > { %3356 = vmatpush3.msk.msra.mxu0 %vm1010_vm3, %v3846_v11  ;;  %3357 = vmatprep.mubr.msk.f32.mxu0 %vm3845_vm2, %v4905_v33  ;;  %vm1022_vm3 = vcmp.eq.s32.totalorder %v4305_v54, %v985_v28 }
 0x10c   : > { %3361 = vmatpush3.msk.msra.mxu1 %vm1013_vm4, %v3846_v11  ;;  %3358 = vmatmul.mubr.msk.f32.vlgmr.msra.gmra.mxu0 %vm441_vm1, %v4056_v14  ;;  %vm1024_vm4 = vcmp.eq.s32.totalorder %v4305_v54, %v989_v44 }
 0x10d   : > { %3362 = vmatprep.subr.mxu1 %v4905_v33  ;;  %3364 = vmatprep.mubr.msk.f32.mxu1 %vm3845_vm2, %v4905_v33 }
 0x10e   : > { %3363 = vmatpush3.msk.msra.mxu1 %vm1012_vm5, %v3846_v11  ;;  %3367 = vmatprep.subr.mxu0 %v4905_v33  ;;  %vm1027_vm5 = vcmp.eq.s32.totalorder %v4340_v60, %v4488_v59 }
 0x10f   : > { %3365 = vmatmul.mubr.msk.f32.vlgmr.msra.gmra.mxu1 %vm441_vm1, %v4053_v13  ;;  %3374 = vmatprep.subr.mxu1 %v4905_v33 }
 0x110   : > { %3368 = vmatpush3.msk.msra.mxu0 %vm1015_vm6, %v3846_v11  ;;  %3375 = vmatpush3.msk.msra.mxu1 %vm1017_vm7, %v3846_v11  ;;  %vm1029_vm6 = vcmp.eq.s32.totalorder %v4340_v60, %v4491_v8  ;;  %vm1028_vm7 = vcmp.eq.s32.totalorder %v4305_v54, %v4491_v8 }
 0x111   : > { %3369 = vmatprep.subr.mxu0 %v4905_v33  ;;  %3376 = vmatprep.subr.mxu1 %v4905_v33 }
 0x112   : > { %3370 = vmatpush3.msk.msra.mxu0 %vm1014_vm8, %v3846_v11  ;;  %3371 = vmatprep.mubr.msk.f32.mxu0 %vm3845_vm2, %v4905_v33 }
 0x113   : > { %3377 = vmatpush3.msk.msra.mxu1 %vm1016_vm9, %v3846_v11  ;;  %3378 = vmatprep.mubr.msk.f32.mxu1 %vm3845_vm2, %v4905_v33 }
 0x114   : > { %3372 = vmatmul.mubr.msk.f32.vlgmr.msra.gmra.mxu0 %vm441_vm1, %v4066_v18  ;;  %3379 = vmatmul.mubr.msk.f32.vlgmr.msra.gmra.mxu1 %vm441_vm1, %v4063_v17 }
 0x115   : > { %3381 = vmatprep.subr.mxu0 %v4905_v33  ;;  %3388 = vmatprep.subr.mxu1 %v4905_v33 }
 0x116   : > { %3382 = vmatpush3.msk.msra.mxu0 %vm1019_vm10, %v3846_v11  ;;  %3389 = vmatpush3.msk.msra.mxu1 %vm1021_vm11, %v3846_v11 }
 0x117   : > { %3383 = vmatprep.subr.mxu0 %v4905_v33  ;;  %3390 = vmatprep.subr.mxu1 %v4905_v33 }
 0x118   : > { %3384 = vmatpush3.msk.msra.mxu0 %vm1018_vm12, %v3846_v11  ;;  %3385 = vmatprep.mubr.msk.f32.mxu0 %vm3845_vm2, %v4905_v33 }
 0x119   : > { %3391 = vmatpush3.msk.msra.mxu1 %vm1020_vm13, %v3846_v11  ;;  %3392 = vmatprep.mubr.msk.f32.mxu1 %vm3845_vm2, %v4905_v33 }
 0x11a   : > { %3386 = vmatmul.mubr.msk.f32.vlgmr.msra.gmra.mxu0 %vm441_vm1, %v4078_v23  ;;  %3393 = vmatmul.mubr.msk.f32.vlgmr.msra.gmra.mxu1 %vm441_vm1, %v4075_v22 }
 0x11b   : > { %3395 = vmatprep.subr.mxu0 %v4905_v33  ;;  %3402 = vmatprep.subr.mxu1 %v4905_v33 }
 0x11c   : > { %3396 = vmatpush3.msk.msra.mxu0 %vm1023_vm14, %v3846_v11  ;;  %3403 = vmatpush3.msk.msra.mxu1 %vm1025_vm15, %v3846_v11 }
 0x11d   : > { %3397 = vmatprep.subr.mxu0 %v4905_v33  ;;  %3404 = vmatprep.subr.mxu1 %v4905_v33 }
 0x11e   : > { %3398 = vmatpush3.msk.msra.mxu0 %vm1022_vm3, %v3846_v11  ;;  %3399 = vmatprep.mubr.msk.f32.mxu0 %vm3845_vm2, %v4905_v33 }
 0x11f   : > { %3405 = vmatpush3.msk.msra.mxu1 %vm1024_vm4, %v3846_v11  ;;  %3406 = vmatprep.mubr.msk.f32.mxu1 %vm3845_vm2, %v4905_v33 }
 0x120   : > { %3400 = vmatmul.mubr.msk.f32.vlgmr.msra.gmra.mxu0 %vm441_vm1, %v4088_v27  ;;  %3407 = vmatmul.mubr.msk.f32.vlgmr.msra.gmra.mxu1 %vm441_vm1, %v4085_v26 }
 0x121   : > { %3409 = vmatprep.subr.mxu0 %v4905_v33  ;;  %3416 = vmatprep.subr.mxu1 %v4905_v33 }
 0x122   : > { %3410 = vmatpush3.msk.msra.mxu0 %vm1027_vm5, %v3846_v11  ;;  %3417 = vmatpush3.msk.msra.mxu1 %vm1029_vm6, %v3846_v11 }
 0x123   : > { %3411 = vmatprep.subr.mxu0 %v4905_v33  ;;  %3418 = vmatprep.subr.mxu1 %v4905_v33 }
 0x124   : > { %3413 = vmatprep.mubr.msk.f32.mxu0 %vm3845_vm2, %v4905_v33  ;;  %3420 = vmatprep.mubr.msk.f32.mxu1 %vm3845_vm2, %v4905_v33  ;;  %vm1026_vm2 = vcmp.eq.s32.totalorder %v4305_v54, %v4488_v59 }
 0x125   : > { %3412 = vmatpush3.msk.msra.mxu0 %vm1026_vm2, %v3846_v11  ;;  %3419 = vmatpush3.msk.msra.mxu1 %vm1028_vm7, %v3846_v11 }
 0x126   : > { %3414 = vmatmul.mubr.msk.f32.vlgmr.msra.gmra.mxu0 %vm441_vm1, %v4098_v31  ;;  %3421 = vmatmul.mubr.msk.f32.vlgmr.msra.gmra.mxu1 %vm441_vm1, %v4095_v30 }
 0x148   : > { %v605_v60 = vpop.permute.xlu0 %604 }
 0x149   : > { %v682_v25 = vsub.f32 %v4026_v2, %v605_v60 }
 0x14b   : > { %v698_v61 = vmul.f32 1.442695, %v682_v25 }
 0x14c   : > { %v610_v53 = vpop.permute.xlu1 %609 }
 0x14d   : > { %3545 = vpow2.f32 %v698_v61  ;;  %v683_v46 = vsub.f32 %v4036_v6, %v610_v53 }
 0x14f   : > { %v700_v0 = vmul.f32 1.442695, %v683_v46 }
 0x150   : > { %v615_v43 = vpop.permute.xlu1 %614 }
 0x151   : > { %3547 = vpow2.f32 %v700_v0  ;;  %v684_v32 = vsub.f32 %v4023_v1, %v615_v43 }
 0x153   : > { %v702_v28 = vmul.f32 1.442695, %v684_v32 }
 0x154   : > { %v620_v44 = vpop.permute.xlu1 %619 }
 0x155   : > { %3549 = vpow2.f32 %v702_v28  ;;  %v685_v51 = vsub.f32 %v4029_v3, %v620_v44 }
 0x157   : > { %v704_v52 = vmul.f32 1.442695, %v685_v51 }
 0x158   : > { %v625_v33 = vpop.permute.xlu1 %624  ;;  %v650_v25 = vpop.permute.xlu0 %649 }
 0x159   : > { %3551 = vpow2.f32 %v704_v52  ;;  %v686_v2 = vsub.f32 %v4046_v10, %v625_v33  ;;  %v691_v44 = vsub.f32 %v4063_v17, %v650_v25 }
 0x15a   : > { %v3546_v60 = vpop.eup %3545 }
 0x15b   : > { %v706_v61 = vmul.f32 1.442695, %v686_v2  ;;  %v730_v6 = vsel %vm441_vm1, %v3546_v60, 0.0 }
 0x15c   : > { %v630_v53 = vpop.permute.xlu1 %629  ;;  %731 = vadd.xlane.f32.xlu1 %v730_v6  ;;  %v660_v3 = vpop.permute.xlu0 %659 }
 0x15d   : > { %3553 = vpow2.f32 %v706_v61  ;;  %v687_v1 = vsub.f32 %v4043_v9, %v630_v53  ;;  %v693_v60 = vsub.f32 %v4075_v22, %v660_v3 }
 0x15e   : > { %v3548_v46 = vpop.eup %3547 }
 0x15f   : > { %v708_v0 = vmul.f32 1.442695, %v687_v1  ;;  %v733_v43 = vsel %vm441_vm1, %v3548_v46, 0.0  ;;  %v720_v59 = vmul.f32 1.442695, %v693_v60 }
 0x160   : > { %734 = vadd.xlane.f32.xlu0 %v733_v43  ;;  %v635_v32 = vpop.permute.xlu1 %634  ;;  %v670_v61 = vpop.permute.xlu0 %669 }
 0x161   : > { %3555 = vpow2.f32 %v708_v0  ;;  %v688_v10 = vsub.f32 %v4056_v14, %v635_v32  ;;  %v716_v14 = vmul.f32 1.442695, %v691_v44  ;;  %v695_v8 = vsub.f32 %v4085_v26, %v670_v61 }
 0x162   : > { %v3550_v28 = vpop.eup %3549 }
 0x163   : > { %v710_v51 = vmul.f32 1.442695, %v688_v10  ;;  %v736_v52 = vsel %vm441_vm1, %v3550_v28, 0.0 }
 0x164   : > { %737 = vadd.xlane.f32.xlu0 %v736_v52  ;;  %v640_v33 = vpop.permute.xlu1 %639  ;;  %v680_v11 = vpop.permute.xlu0 %679 }
 0x165   : > { %3557 = vpow2.f32 %v710_v51  ;;  %v689_v9 = vsub.f32 %v4053_v13, %v640_v33  ;;  %v697_v3 = vsub.f32 %v4095_v30, %v680_v11 }
 0x166   : > { %v3552_v2 = vpop.eup %3551 }
 0x167   : > { %v712_v17 = vmul.f32 1.442695, %v689_v9  ;;  %v739_v25 = vsel %vm441_vm1, %v3552_v2, 0.0  ;;  %v728_v51 = vmul.f32 1.442695, %v697_v3  ;;  %v4907_v3 = vsub.f32 %v4150_v42, %v4165_v48  ;;  %v522_v48 = vld [vmem:[#allocation5] sm:$0xff] }
 0x168   : > { %v645_v6 = vpop.permute.xlu1 %644  ;;  %740 = vadd.xlane.f32.xlu1 %v739_v25 }
 0x169   : > { %3559 = vpow2.f32 %v712_v17  ;;  %v690_v13 = vsub.f32 %v4066_v18, %v645_v6  ;;  %v724_v18 = vmul.f32 1.442695, %v695_v8 }
 0x16a   : > { %v3554_v22 = vpop.eup %3553  ;;  %3561 = vpow2.f32 %v716_v14 }
 0x16b   : > { %v714_v53 = vmul.f32 1.442695, %v690_v13  ;;  %v742_v1 = vsel %vm441_vm1, %v3554_v22, 0.0 }
 0x16c   : > { %743 = vadd.xlane.f32.xlu0 %v742_v1  ;;  %v655_v46 = vpop.permute.xlu1 %654 }
 0x16d   : > { %3563 = vpow2.f32 %v714_v53  ;;  %v692_v0 = vsub.f32 %v4078_v23, %v655_v46 }
 0x16e   : > { %v3556_v43 = vpop.eup %3555  ;;  %3565 = vpow2.f32 %v720_v59 }
 0x16f   : > { %v718_v32 = vmul.f32 1.442695, %v692_v0  ;;  %v745_v10 = vsel %vm441_vm1, %v3556_v43, 0.0  ;;  %v4906_v43 = vsub.f32 %v4140_v36, %v4146_v40  ;;  %v4910_v36 = vsub.f32 %v4169_v50, %v4184_v56 }
 0x170   : > { %v665_v28 = vpop.permute.xlu1 %664  ;;  %746 = vadd.xlane.f32.xlu1 %v745_v10  ;;  %v4908_v10 = vsub.f32 %v4138_v35, %v4143_v39  ;;  %v4911_v35 = vsub.f32 %v4167_v49, %v4181_v55  ;;  %v4913_v49 = vsub.f32 %v4186_v57, %v4200_v63 }
 0x171   : > { %3567 = vpow2.f32 %v718_v32  ;;  %v694_v26 = vsub.f32 %v4088_v27, %v665_v28  ;;  %v556_v32 = vmul.f32 1.442695, %v4907_v3  ;;  %v562_v40 = vmul.f32 1.442695, %v4910_v36  ;;  %v4921_v36 = vld [vmem:[#allocation15_spill] sm:$0xff] }
 0x172   : > { %v3558_v44 = vpop.eup %3557  ;;  %3569 = vpow2.f32 %v724_v18  ;;  %v554_v18 = vmul.f32 1.442695, %v4906_v43  ;;  %v558_v28 = vmul.f32 1.442695, %v4908_v10  ;;  %v564_v39 = vmul.f32 1.442695, %v4911_v35 }
 0x173   : > { %v722_v52 = vmul.f32 1.442695, %v694_v26  ;;  %v748_v33 = vsel %vm441_vm1, %v3558_v44, 0.0  ;;  %v4909_v44 = vsub.f32 %v4148_v41, %v4162_v47  ;;  %v4912_v41 = vsub.f32 %v4188_v58, %v4203_v4 }
 0x174   : > { %749 = vadd.xlane.f32.xlu0 %v748_v33  ;;  %v675_v23 = vpop.permute.xlu1 %674  ;;  %v568_v55 = vmul.f32 1.442695, %v4913_v49  ;;  %v4914_v58 = vsub.f32 %v4205_v5, %v4219_v16  ;;  %v4918_v3 = vsub.f32 %v4244_v38, %v4259_v62 }
 0x175   : > { %3571 = vpow2.f32 %v722_v52  ;;  %v696_v9 = vsub.f32 %v4098_v31, %v675_v23  ;;  %v566_v47 = vmul.f32 1.442695, %v4912_v41 }
 0x176   : > { %v3560_v30 = vpop.eup %3559  ;;  %3573 = vpow2.f32 %v728_v51  ;;  %v560_v51 = vmul.f32 1.442695, %v4909_v44  ;;  %v572_v4 = vmul.f32 1.442695, %v4914_v58 }
 0x177   : > { %v726_v2 = vmul.f32 1.442695, %v696_v9  ;;  %v751_v60 = vsel %vm441_vm1, %v3560_v30, 0.0  ;;  %v3562_v61 = vpop.eup %3561  ;;  %v523_v30 = vld [vmem:[#allocation5 + $0x8] sm:$0xff] }
 0x178   : > { %752 = vadd.xlane.f32.xlu1 %v751_v60  ;;  %v757_v25 = vsel %vm441_vm1, %v3562_v61, 0.0  ;;  %v524_v61 = vld [vmem:[#allocation5 + $0x10] sm:$0xff] }
 0x179   : > { %3575 = vpow2.f32 %v726_v2 }
 0x17a   : > { %v3564_v27 = vpop.eup %3563  ;;  %3577 = vpow2.f32 %v554_v18  ;;  %v527_v18 = vld [vmem:[#allocation5 + $0x28] sm:$0xff] }
 0x17b   : > { %v3566_v14 = vpop.eup %3565  ;;  %v754_v17 = vsel %vm441_vm1, %v3564_v27, 0.0  ;;  %3579 = vpow2.f32 %v556_v32  ;;  %v4919_v32 = vsub.f32 %v4246_v45, %v4262_v12 }
 0x17c   : > { %755 = vadd.xlane.f32.xlu0 %v754_v17  ;;  %758 = vadd.xlane.f32.xlu1 %v757_v25  ;;  %v763_v31 = vsel %vm441_vm1, %v3566_v14, 0.0  ;;  %3581 = vpow2.f32 %v558_v28 }
 0x17d   : > { %3583 = vpow2.f32 %v560_v51  ;;  %v528_v51 = vld [vmem:[#allocation5 + $0x30] sm:$0xff] }
 0x17e   : > { %v3568_v6 = vpop.eup %3567  ;;  %3585 = vpow2.f32 %v562_v40  ;;  %v4922_v40 = vsub.f32 %v4266_v29, %v4921_v36 }
 0x17f   : > { %v760_v13 = vsel %vm441_vm1, %v3568_v6, 0.0  ;;  %v3570_v22 = vpop.eup %3569  ;;  %3587 = vpow2.f32 %v564_v39  ;;  %v525_v6 = vld [vmem:[#allocation5 + $0x18] sm:$0xff] }
 0x180   : > { %761 = vadd.xlane.f32.xlu0 %v760_v13  ;;  %764 = vadd.xlane.f32.xlu1 %v763_v31  ;;  %v769_v53 = vsel %vm441_vm1, %v3570_v22, 0.0  ;;  %3589 = vpow2.f32 %v566_v47  ;;  %v4915_v31 = vsub.f32 %v4207_v7, %v4222_v19  ;;  %v582_v45 = vmul.f32 1.442695, %v4922_v40 }
 0x181   : > { %3591 = vpow2.f32 %v568_v55 }
 0x182   : > { %v3572_v59 = vpop.eup %3571  ;;  %v570_v22 = vmul.f32 1.442695, %v4915_v31 }
 0x183   : > { %v766_v8 = vsel %vm441_vm1, %v3572_v59, 0.0  ;;  %v3574_v1 = vpop.eup %3573 }
 0x184   : > { %767 = vadd.xlane.f32.xlu0 %v766_v8  ;;  %770 = vadd.xlane.f32.xlu1 %v769_v53  ;;  %v775_v0 = vsel %vm441_vm1, %v3574_v1, 0.0  ;;  %v526_v53 = vld [vmem:[#allocation5 + $0x20] sm:$0xff]  ;;  %v4916_v1 = vsub.f32 %v4224_v20, %v4239_v34  ;;  %v580_v20 = vmul.f32 1.442695, %v4918_v3 }
 0x186   : > { %v3576_v11 = vpop.eup %3575  ;;  %v576_v5 = vmul.f32 1.442695, %v4916_v1 }
 0x187   : > { %v772_v46 = vsel %vm441_vm1, %v3576_v11, 0.0  ;;  %v3578_v42 = vpop.eup %3577  ;;  %v4917_v11 = vsub.f32 %v4226_v24, %v4242_v37  ;;  %v578_v24 = vmul.f32 1.442695, %v4919_v32  ;;  %v535_v32 = vld [vmem:[#allocation5 + $0x68] sm:$0xff] }
 0x188   : > { %773 = vadd.xlane.f32.xlu0 %v772_v46  ;;  %776 = vadd.xlane.f32.xlu1 %v775_v0  ;;  %v586_v33 = vmul.f32 %v3578_v42, %v522_v48  ;;  %v3580_v23 = vpop.eup %3579 }
 0x189   : > { %v587_v50 = vmul.f32 %v3580_v23, %v523_v30  ;;  %v3582_v56 = vpop.eup %3581  ;;  %v574_v7 = vmul.f32 1.442695, %v4917_v11  ;;  %v2313_v30 = vld [vmem:[#allocation4] sm:$0xff] }
 0x18a   : > { %v588_v14 = vmul.f32 %v3582_v56, %v524_v61  ;;  %v3584_v17 = vpop.eup %3583  ;;  %v531_v61 = vld [vmem:[#allocation5 + $0x48] sm:$0xff] }
 0x18b   : > { %v589_v57 = vmul.f32 %v3584_v17, %v525_v6  ;;  %v3586_v63 = vpop.eup %3585 }
 0x18c   : > { %v590_v46 = vmul.f32 %v3586_v63, %v526_v53  ;;  %v3588_v0 = vpop.eup %3587  ;;  %v532_v53 = vld [vmem:[#allocation5 + $0x50] sm:$0xff] }
 0x18d   : > { %v591_v10 = vmul.f32 %v3588_v0, %v527_v18  ;;  %v3590_v28 = vpop.eup %3589 }
 0x18e   : > { %v3592_v42 = vpop.eup %3591  ;;  %v592_v48 = vmul.f32 %v3590_v28, %v528_v51 }
 0x1bc   : > { %v4573_v26 = vpop.f32.mrf.mxu0 }
 0x1be   : > { %v3317_v52 = vpop.f32.mrf.mxu0 }
 0x1bf   : > { %v4920_v52 = vsub.f32 %v4264_v15, %v4279_v21  ;;  %v4620_v21 = vpop.f32.mrf.mxu1 }
 0x1c1   : > { %v584_v38 = vmul.f32 1.442695, %v4920_v52  ;;  %v2316_v52 = vld [vmem:[#allocation4 + $0x18] sm:$0xff] }
 0x1e5   : > { %v732_v9 = vpop.xlane.xlu1 %731 }
 0x1e6   : > { %v778_v2 = vadd.f32 %v732_v9, %v586_v33  ;;  %v529_v33 = vld [vmem:[#allocation5 + $0x38] sm:$0xff] }
 0x1e7   : > { %v593_v41 = vmul.f32 %v3592_v42, %v529_v33  ;;  %v536_v33 = vld [vmem:[#allocation5 + $0x70] sm:$0xff] }
 0x1e8   : > { %795 = vst.msk [vmem:[#allocation5] sm:$0xff] %vm392_vm0, %v778_v2 }
 0x1e9   : > { %v735_v60 = vpop.xlane.xlu0 %734 }
 0x1ea   : > { %v779_v27 = vadd.f32 %v735_v60, %v587_v50  ;;  %v3324_v50 = vpop.f32.mrf.mxu1 }
 0x1ec   : > { %796 = vst.msk [vmem:[#allocation5 + $0x8] sm:$0xff] %vm392_vm0, %v779_v27  ;;  %v530_v27 = vld [vmem:[#allocation5 + $0x40] sm:$0xff] }
 0x1ed   : > { %v738_v25 = vpop.xlane.xlu0 %737 }
 0x1ee   : > { %v780_v13 = vadd.f32 %v738_v25, %v588_v14  ;;  %v4623_v14 = vpop.f32.mrf.mxu0  ;;  %v2314_v25 = vld [vmem:[#allocation4 + $0x8] sm:$0xff] }
 0x1ef   : > { %v2329_v59 = vld [vmem:[#allocation5] sm:$0xff] }
 0x1f0   : > { %797 = vst.msk [vmem:[#allocation5 + $0x10] sm:$0xff] %vm392_vm0, %v780_v13  ;;  %3593 = vlog2.f32 %v2329_v59 }
 0x1f1   : > { %v741_v8 = vpop.xlane.xlu1 %740  ;;  %3595 = vpow2.f32 %v572_v4 }
 0x1f2   : > { %v781_v16 = vadd.f32 %v741_v8, %v589_v57  ;;  %3597 = vpow2.f32 %v570_v22  ;;  %v3331_v22 = vpop.f32.mrf.mxu0  ;;  %v533_v8 = vld [vmem:[#allocation5 + $0x58] sm:$0xff] }
 0x1f3   : > { %v2330_v19 = vld [vmem:[#allocation5 + $0x8] sm:$0xff] }
 0x1f4   : > { %798 = vst.msk [vmem:[#allocation5 + $0x18] sm:$0xff] %vm392_vm0, %v781_v16  ;;  %3599 = vlog2.f32 %v2330_v19 }
 0x1f5   : > { %v744_v43 = vpop.xlane.xlu0 %743  ;;  %3601 = vpow2.f32 %v576_v5 }
 0x1f6   : > { %v782_v34 = vadd.f32 %v744_v43, %v590_v46  ;;  %3603 = vpow2.f32 %v574_v7  ;;  %v2315_v7 = vld [vmem:[#allocation4 + $0x10] sm:$0xff] }
 0x1f7   : > { %v2331_v37 = vld [vmem:[#allocation5 + $0x10] sm:$0xff] }
 0x1f8   : > { %799 = vst.msk [vmem:[#allocation5 + $0x20] sm:$0xff] %vm392_vm0, %v782_v34  ;;  %3605 = vlog2.f32 %v2331_v37 }
 0x1f9   : > { %v747_v44 = vpop.xlane.xlu1 %746  ;;  %3607 = vpow2.f32 %v580_v20 }
 0x1fa   : > { %v783_v62 = vadd.f32 %v747_v44, %v591_v10  ;;  %3609 = vpow2.f32 %v578_v24  ;;  %v534_v24 = vld [vmem:[#allocation5 + $0x60] sm:$0xff]  ;;  %v4628_v44 = vpop.f32.mrf.mxu1 }
 0x1fb   : > { %v2332_v12 = vld [vmem:[#allocation5 + $0x18] sm:$0xff] }
 0x1fc   : > { %800 = vst.msk [vmem:[#allocation5 + $0x28] sm:$0xff] %vm392_vm0, %v783_v62  ;;  %3611 = vlog2.f32 %v2332_v12  ;;  %v3338_v12 = vpop.f32.mrf.mxu1 }
 0x1fd   : > { %v3594_v35 = vpop.eup %3593  ;;  %v750_v39 = vpop.xlane.xlu0 %749  ;;  %3613 = vpow2.f32 %v584_v38 }
 0x1fe   : > { %v784_v23 = vadd.f32 %v750_v39, %v592_v48  ;;  %v2346_v9 = vmul.f32 0.6931472, %v3594_v35  ;;  %v3596_v15 = vpop.eup %3595  ;;  %3615 = vpow2.f32 %v582_v45  ;;  %v537_v39 = vld [vmem:[#allocation5 + $0x78] sm:$0xff] }
 0x1ff   : > { %v2333_v2 = vld [vmem:[#allocation5 + $0x20] sm:$0xff]  ;;  %v3598_v29 = vpop.eup %3597  ;;  %v595_v4 = vmul.f32 %v3596_v15, %v531_v61 }
 0x200   : > { %801 = vst.msk [vmem:[#allocation5 + $0x30] sm:$0xff] %vm392_vm0, %v784_v23  ;;  %v2377_v47 = vadd.f32 %v2346_v9, %v2313_v30  ;;  %3617 = vlog2.f32 %v2333_v2  ;;  %v594_v13 = vmul.f32 %v3598_v29, %v530_v27  ;;  %v4632_v30 = vpop.f32.mrf.mxu0  ;;  %v2317_v2 = vld [vmem:[#allocation4 + $0x20] sm:$0xff] }
 0x201   : > { %v3600_v56 = vpop.eup %3599  ;;  %v753_v60 = vpop.xlane.xlu1 %752 }
 0x202   : > { %v785_v49 = vadd.f32 %v753_v60, %v593_v41  ;;  %2411 = vperm.xlu0 %3541, %v2377_v47   ;;  %v2348_v55 = vmul.f32 0.6931472, %v3600_v56  ;;  %v3602_v17 = vpop.eup %3601  ;;  %v3345_v60 = vpop.f32.mrf.mxu0 }
 0x203   : > { %v2334_v6 = vld [vmem:[#allocation5 + $0x28] sm:$0xff]  ;;  %v3604_v58 = vpop.eup %3603  ;;  %v597_v0 = vmul.f32 %v3602_v17, %v533_v8 }
 0x204   : > { %802 = vst.msk [vmem:[#allocation5 + $0x38] sm:$0xff] %vm392_vm0, %v785_v49  ;;  %v2378_v31 = vadd.f32 %v2348_v55, %v2314_v25  ;;  %3619 = vlog2.f32 %v2334_v6  ;;  %v596_v43 = vmul.f32 %v3604_v58, %v532_v53  ;;  %v4636_v6 = vpop.f32.mrf.mxu1  ;;  %v2318_v58 = vld [vmem:[#allocation4 + $0x28] sm:$0xff]  ;;  %v2319_v53 = vld [vmem:[#allocation4 + $0x30] sm:$0xff] }
 0x205   : > { %v3606_v59 = vpop.eup %3605  ;;  %v759_v57 = vpop.xlane.xlu1 %758  ;;  %v2326_v60 = vld [vmem:[#allocation4 + $0x68] sm:$0xff] }
 0x206   : > { %v756_v63 = vpop.xlane.xlu0 %755  ;;  %v787_v1 = vadd.f32 %v759_v57, %v595_v4  ;;  %2416 = vperm.xlu1 %3542, %v2378_v31   ;;  %v2350_v16 = vmul.f32 0.6931472, %v3606_v59  ;;  %v3608_v11 = vpop.eup %3607 }
 0x207   : > { %v786_v5 = vadd.f32 %v756_v63, %v594_v13  ;;  %v2335_v19 = vld [vmem:[#allocation5 + $0x30] sm:$0xff]  ;;  %v3610_v46 = vpop.eup %3609  ;;  %v599_v36 = vmul.f32 %v3608_v11, %v535_v32  ;;  %v4638_v31 = vpop.f32.mrf.mxu0 }
 0x208   : > { %804 = vst.msk [vmem:[#allocation5 + $0x48] sm:$0xff] %vm392_vm0, %v787_v1  ;;  %v2379_v18 = vadd.f32 %v2350_v16, %v2315_v7  ;;  %3621 = vlog2.f32 %v2335_v19  ;;  %v598_v40 = vmul.f32 %v3610_v46, %v534_v24  ;;  %v3352_v59 = vpop.f32.mrf.mxu1 }
 0x209   : > { %803 = vst.msk [vmem:[#allocation5 + $0x40] sm:$0xff] %vm392_vm0, %v786_v5  ;;  %v3612_v3 = vpop.eup %3611  ;;  %v765_v20 = vpop.xlane.xlu1 %764 }
 0x20a   : > { %v762_v34 = vpop.xlane.xlu0 %761  ;;  %v789_v37 = vadd.f32 %v765_v20, %v597_v0  ;;  %2421 = vperm.xlu1 %3542, %v2379_v18   ;;  %v2352_v28 = vmul.f32 0.6931472, %v3612_v3  ;;  %v3614_v51 = vpop.eup %3613  ;;  %v2320_v0 = vld [vmem:[#allocation4 + $0x38] sm:$0xff] }
 0x20b   : > { %v788_v10 = vadd.f32 %v762_v34, %v596_v43  ;;  %v2336_v38 = vld [vmem:[#allocation5 + $0x38] sm:$0xff]  ;;  %v3616_v62 = vpop.eup %3615  ;;  %v601_v47 = vmul.f32 %v3614_v51, %v537_v39  ;;  %v3359_v63 = vpop.f32.mrf.mxu0  ;;  %v2322_v51 = vld [vmem:[#allocation4 + $0x48] sm:$0xff] }
 0x20c   : > { %806 = vst.msk [vmem:[#allocation5 + $0x58] sm:$0xff] %vm392_vm0, %v789_v37  ;;  %v2380_v45 = vadd.f32 %v2352_v28, %v2316_v52  ;;  %3623 = vlog2.f32 %v2336_v38  ;;  %v600_v50 = vmul.f32 %v3616_v62, %v536_v33  ;;  %v4642_v11 = vpop.f32.mrf.mxu1  ;;  %v2321_v62 = vld [vmem:[#allocation4 + $0x40] sm:$0xff]  ;;  %v2324_v33 = vld [vmem:[#allocation4 + $0x58] sm:$0xff] }
 0x20d   : > { %805 = vst.msk [vmem:[#allocation5 + $0x50] sm:$0xff] %vm392_vm0, %v788_v10  ;;  %v3618_v42 = vpop.eup %3617  ;;  %v771_v48 = vpop.xlane.xlu1 %770  ;;  %v4666_v63 = vld [vmem:[%s361_s7] sm:$0xff] }
 0x20e   : > { %v768_v35 = vpop.xlane.xlu0 %767  ;;  %v791_v23 = vadd.f32 %v771_v48, %v599_v36  ;;  %2426 = vperm.xlu0 %3541, %v2380_v45   ;;  %v2354_v15 = vmul.f32 0.6931472, %v3618_v42  ;;  %v3366_v46 = vpop.f32.mrf.mxu1  ;;  %vm2814_vm1 = vcmp.ge.s32.totalorder %v4666_v63, 1 }
 0x20f   : > { %v790_v9 = vadd.f32 %v768_v35, %v598_v40  ;;  %v2338_v29 = vld [vmem:[#allocation5 + $0x48] sm:$0xff]  ;;  %v4644_v20 = vpop.f32.mrf.mxu0  ;;  %v4923_v46 = vmov 0  }
 0x210   : > { %v2337_v41 = vld [vmem:[#allocation5 + $0x40] sm:$0xff]  ;;  %808 = vst.msk [vmem:[#allocation5 + $0x68] sm:$0xff] %vm392_vm0, %v791_v23  ;;  %v2381_v56 = vadd.f32 %v2354_v15, %v2317_v2  ;;  %3625 = vlog2.f32 %v2338_v29  ;;  %v4646_v34 = vpop.f32.mrf.mxu1  ;;  %v2323_v15 = vld [vmem:[#allocation4 + $0x50] sm:$0xff] }
 0x211   : > { %807 = vst.msk [vmem:[#allocation5 + $0x60] sm:$0xff] %vm392_vm0, %v790_v9  ;;  %v3620_v61 = vpop.eup %3619  ;;  %v777_v27 = vpop.xlane.xlu1 %776  ;;  %3627 = vlog2.f32 %v2337_v41 }
 0x212   : > { %v774_v49 = vpop.xlane.xlu0 %773  ;;  %v793_v55 = vadd.f32 %v777_v27, %v601_v47  ;;  %2431 = vperm.xlu1 %3542, %v2381_v56   ;;  %v2356_v25 = vmul.f32 0.6931472, %v3620_v61  ;;  %v3373_v10 = vpop.f32.mrf.mxu0 }
 0x213   : > { %v792_v17 = vadd.f32 %v774_v49, %v600_v50  ;;  %v2340_v4 = vld [vmem:[#allocation5 + $0x58] sm:$0xff]  ;;  %v3380_v28 = vpop.f32.mrf.mxu1 }
 0x214   : > { %v2339_v13 = vld [vmem:[#allocation5 + $0x50] sm:$0xff]  ;;  %810 = vst.msk [vmem:[#allocation5 + $0x78] sm:$0xff] %vm392_vm0, %v793_v55  ;;  %v2382_v22 = vadd.f32 %v2356_v25, %v2318_v58  ;;  %3629 = vlog2.f32 %v2340_v4  ;;  %v4648_v36 = vpop.f32.mrf.mxu0  ;;  %v4660_v4 = vld [vmem:[%s361_s7 + $0x8] sm:$0xff] }
 0x215   : > { %809 = vst.msk [vmem:[#allocation5 + $0x70] sm:$0xff] %vm392_vm0, %v792_v17  ;;  %v3622_v57 = vpop.eup %3621  ;;  %3631 = vlog2.f32 %v2339_v13  ;;  %v4650_v40 = vpop.f32.mrf.mxu1  ;;  %v2325_v17 = vld [vmem:[#allocation4 + $0x60] sm:$0xff]  ;;  %vm2815_vm0 = vcmp.ge.s32.totalorder %v4660_v4, 1 }
 0x216   : > { %2436 = vperm.xlu0 %3541, %v2382_v22   ;;  %v2358_v8 = vmul.f32 0.6931472, %v3622_v57  ;;  %v3387_v35 = vpop.f32.mrf.mxu0 }
 0x217   : > { %v2342_v1 = vld [vmem:[#allocation5 + $0x68] sm:$0xff]  ;;  %v3394_v39 = vpop.f32.mrf.mxu1  ;;  %v3848_v35 = vmov 1934713408  }
 0x218   : > { %v2341_v5 = vld [vmem:[#allocation5 + $0x60] sm:$0xff]  ;;  %v2383_v16 = vadd.f32 %v2358_v8, %v2319_v53  ;;  %3633 = vlog2.f32 %v2342_v1  ;;  %v4652_v41 = vpop.f32.mrf.mxu0  ;;  %v2328_v8 = vld [vmem:[#allocation4 + $0x78] sm:$0xff]  ;;  %v2572_v39 = vunpack.c.l.s4 %v3848_v35 }
 0x219   : > { %v3624_v7 = vpop.eup %3623  ;;  %3635 = vlog2.f32 %v2341_v5  ;;  %v4654_v47 = vpop.f32.mrf.mxu1 }
 0x21a   : > { %2441 = vperm.xlu1 %3542, %v2383_v16   ;;  %v2360_v19 = vmul.f32 0.6931472, %v3624_v7  ;;  %v3401_v27 = vpop.f32.mrf.mxu0  ;;  %v2327_v7 = vld [vmem:[#allocation4 + $0x70] sm:$0xff] }
 0x21b   : > { %v2344_v43 = vld [vmem:[#allocation5 + $0x78] sm:$0xff]  ;;  %v3408_v49 = vpop.f32.mrf.mxu1 }
 0x21c   : > { %v2343_v18 = vld [vmem:[#allocation5 + $0x70] sm:$0xff]  ;;  %v2384_v3 = vadd.f32 %v2360_v19, %v2320_v0  ;;  %3637 = vlog2.f32 %v2344_v43  ;;  %v4662_v13 = vpop.f32.mrf.mxu0  ;;  %v2817_v0 = vsel %vm2815_vm0, 1, %v4923_v46  ;;  %v2816_v43 = vsel %vm2814_vm1, 1, %v4923_v46 }
 0x21d   : > { %v3626_v32 = vpop.eup %3625  ;;  %3639 = vlog2.f32 %v2343_v18  ;;  %v4664_v22 = vpop.f32.mrf.mxu1  ;;  %v4924_v18 = vlaneseq }
 0x21e   : > { %v3628_v24 = vpop.eup %3627  ;;  %2446 = vperm.xlu0 %3541, %v2384_v3   ;;  %v2364_v37 = vmul.f32 0.6931472, %v3626_v32  ;;  %v3415_v1 = vpop.f32.mrf.mxu0  ;;  %v4925_v32 = vmov -1e+30  }
 0x21f   : > { %v2362_v52 = vmul.f32 0.6931472, %v3628_v24  ;;  %v3422_v5 = vpop.f32.mrf.mxu1  ;;  %v4677_v3 = vand.u32 127, %v4924_v18 }
 0x220   : > { %v2386_v38 = vadd.f32 %v2364_v37, %v2322_v51 }
 0x221   : > { %v3630_v45 = vpop.eup %3629  ;;  %v2385_v12 = vadd.f32 %v2362_v52, %v2321_v62  ;;  %vm2802_vm8 = vcmp.ge.s32.totalorder %v4677_v3, 1  ;;  %v3847_v52 = vmov 1983009808   ;;  %vm2813_vm9 = vcmp.eq.s32.totalorder %v4677_v3, 1 }
 0x222   : > { %v3632_v42 = vpop.eup %3631  ;;  %2456 = vperm.xlu0 %3541, %v2386_v38   ;;  %v2368_v48 = vmul.f32 0.6931472, %v3630_v45  ;;  %v4681_v24 = vsel %vm2802_vm8, 0.0, %v4925_v32  ;;  %v2508_v38 = vunpack.c.l.s4 %v3847_v52  ;;  %vm2812_vm10 = vcmp.eq.s32.totalorder %v4677_v3, 0 }
 0x223   : > { %2451 = vperm.xlu1 %3542, %v2385_v12   ;;  %v2366_v23 = vmul.f32 0.6931472, %v3632_v42 }
 0x224   : > { %v2388_v9 = vadd.f32 %v2368_v48, %v2324_v33  ;;  %v2509_v42 = vunpack.c.0.s8 %v2508_v38 }
 0x225   : > { %v3634_v2 = vpop.eup %3633  ;;  %v2387_v29 = vadd.f32 %v2366_v23, %v2323_v15 }
 0x226   : > { %v3636_v50 = vpop.eup %3635  ;;  %2466 = vperm.xlu0 %3541, %v2388_v9   ;;  %v2372_v56 = vmul.f32 0.6931472, %v3634_v2 }
 0x227   : > { %2461 = vperm.xlu1 %3542, %v2387_v29   ;;  %v2370_v61 = vmul.f32 0.6931472, %v3636_v50  ;;  %v4689_v50 = vsub.s32 %v2509_v42, %v4305_v54 }
 0x228   : > { %v2390_v55 = vadd.f32 %v2372_v56, %v2326_v60  ;;  %v2573_v60 = vunpack.c.0.s8 %v2572_v39 }
 0x229   : > { %v3638_v25 = vpop.eup %3637  ;;  %v2389_v58 = vadd.f32 %v2370_v61, %v2325_v17 }
 0x22a   : > { %v3640_v59 = vpop.eup %3639  ;;  %2476 = vperm.xlu0 %3541, %v2390_v55   ;;  %v2376_v57 = vmul.f32 0.6931472, %v3638_v25 }
 0x22b   : > { %2471 = vperm.xlu1 %3542, %v2389_v58   ;;  %v2374_v53 = vmul.f32 0.6931472, %v3640_v59  ;;  %v4699_v58 = vsub.s32 %v2573_v60, %v4305_v54 }
 0x22c   : > { %v2392_v16 = vadd.f32 %v2376_v57, %v2328_v8 }
 0x22d   : > { %v2391_v19 = vadd.f32 %v2374_v53, %v2327_v7 }
 0x22e   : > { %2486 = vperm.xlu0 %3541, %v2392_v16  }
 0x22f   : > { %2481 = vperm.xlu1 %3542, %v2391_v19  }
 0x232   : > { %2822 = vperm.xlu0 %3541, %v2817_v0  }
 0x233   : > { %2819 = vperm.xlu1 %3542, %v2816_v43  }
 0x27d   : > { %v2412_v10 = vpop.permute.xlu0 %2411 }
 0x27e   : > { %v2489_v33 = vsub.f32 %v4573_v26, %v2412_v10 }
 0x281   : > { %v2417_v37 = vpop.permute.xlu1 %2416 }
 0x282   : > { %v2490_v12 = vsub.f32 %v4620_v21, %v2417_v37 }
 0x285   : > { %v2422_v28 = vpop.permute.xlu1 %2421 }
 0x286   : > { %v2491_v48 = vsub.f32 %v4623_v14, %v2422_v28 }
 0x288   : > { %v2506_v56 = vcombine.high %v2489_v33, %v2491_v48 }
 0x289   : > { %v2427_v51 = vpop.permute.xlu0 %2426 }
 0x28a   : > { %v2492_v62 = vsub.f32 %v4628_v44, %v2427_v51  ;;  %v2505_v44 = vcombine.low %v2489_v33, %v2491_v48  ;;  %v2520_v25 = vrot.slane %v2506_v56, %v4689_v50 }
 0x28c   : > { %v2521_v23 = vcombine.low %v2490_v12, %v2492_v62  ;;  %v2522_v9 = vcombine.high %v2490_v12, %v2492_v62 }
 0x28d   : > { %v2432_v45 = vpop.permute.xlu1 %2431 }
 0x28e   : > { %v2493_v21 = vsub.f32 %v4632_v30, %v2432_v45  ;;  %v2529_v14 = vrot.slane %v2521_v23, %v4689_v50  ;;  %v2536_v61 = vrot.slane %v2522_v9, %v4689_v50 }
 0x290   : > { %v2585_v53 = vcombine.low %v2520_v25, %v2536_v61  ;;  %v2586_v1 = vcombine.high %v2520_v25, %v2536_v61 }
 0x291   : > { %v2437_v15 = vpop.permute.xlu0 %2436 }
 0x292   : > { %v2494_v26 = vsub.f32 %v4636_v6, %v2437_v15  ;;  %v2593_v37 = vrot.slane %v2585_v53, %v4699_v58  ;;  %v2600_v10 = vrot.slane %v2586_v1, %v4699_v58 }
 0x295   : > { %v2442_v2 = vpop.permute.xlu1 %2441 }
 0x296   : > { %v2495_v29 = vsub.f32 %v4638_v31, %v2442_v2  ;;  %v2513_v31 = vrot.slane %v2505_v44, %v4689_v50 }
 0x298   : > { %v2537_v49 = vcombine.low %v2493_v21, %v2495_v29  ;;  %v2538_v55 = vcombine.high %v2493_v21, %v2495_v29  ;;  %v2569_v57 = vcombine.low %v2513_v31, %v2529_v14  ;;  %v2570_v8 = vcombine.high %v2513_v31, %v2529_v14 }
 0x299   : > { %v2447_v27 = vpop.permute.xlu0 %2446 }
 0x29a   : > { %v2496_v17 = vsub.f32 %v4642_v11, %v2447_v27  ;;  %v2545_v6 = vrot.slane %v2537_v49, %v4689_v50  ;;  %v2552_v16 = vrot.slane %v2538_v55, %v4689_v50  ;;  %v2577_v18 = vrot.slane %v2569_v57, %v4699_v58 }
 0x29b   : > { %v2584_v32 = vrot.slane %v2570_v8, %v4699_v58 }
 0x29c   : > { %v2553_v59 = vcombine.low %v2494_v26, %v2496_v17  ;;  %v2554_v30 = vcombine.high %v2494_v26, %v2496_v17 }
 0x29d   : > { %v2457_v5 = vpop.permute.xlu0 %2456 }
 0x29e   : > { %v2561_v11 = vrot.slane %v2553_v59, %v4689_v50  ;;  %v2568_v7 = vrot.slane %v2554_v30, %v4689_v50  ;;  %v2452_v19 = vpop.permute.xlu1 %2451  ;;  %v2498_v42 = vsub.f32 %v4646_v34, %v2457_v5 }
 0x29f   : > { %v2497_v12 = vsub.f32 %v4644_v20, %v2452_v19 }
 0x2a0   : > { %v2601_v46 = vcombine.low %v2545_v6, %v2561_v11  ;;  %v2602_v0 = vcombine.high %v2545_v6, %v2561_v11  ;;  %v2617_v54 = vcombine.low %v2552_v16, %v2568_v7  ;;  %v2618_v43 = vcombine.high %v2552_v16, %v2568_v7 }
 0x2a1   : > { %v2467_v28 = vpop.permute.xlu0 %2466 }
 0x2a2   : > { %v2609_v51 = vrot.slane %v2601_v46, %v4699_v58  ;;  %v2616_v52 = vrot.slane %v2602_v0, %v4699_v58  ;;  %v2625_v38 = vrot.slane %v2617_v54, %v4699_v58  ;;  %v2632_v62 = vrot.slane %v2618_v43, %v4699_v58  ;;  %v2462_v45 = vpop.permute.xlu1 %2461 }
 0x2a3   : > { %v2499_v48 = vsub.f32 %v4648_v36, %v2462_v45  ;;  %v2500_v35 = vsub.f32 %v4650_v40, %v2467_v28 }
 0x2a4   : > { %v4717_v39 = vcombine.low %v2577_v18, %v2609_v51  ;;  %v2634_v33 = vcombine.high %v2577_v18, %v2609_v51  ;;  %v2635_v23 = vcombine.low %v2584_v32, %v2616_v52  ;;  %v2636_v9 = vcombine.high %v2584_v32, %v2616_v52 }
 0x2a5   : > { %v2637_v15 = vcombine.low %v2593_v37, %v2625_v38  ;;  %v2638_v2 = vcombine.high %v2593_v37, %v2625_v38  ;;  %v2639_v29 = vcombine.low %v2600_v10, %v2632_v62  ;;  %v2640_v44 = vcombine.high %v2600_v10, %v2632_v62  ;;  %v2477_v56 = vpop.permute.xlu0 %2476 }
 0x2a6   : > { %2779 = vst [vmem:[#allocation2] sm:$0xff] %v4717_v39  ;;  %2781 = vst [vmem:[#allocation2 + $0x10] sm:$0xff] %v2634_v33  ;;  %v2641_v20 = vcombine.low %v2497_v12, %v2499_v48  ;;  %v2657_v34 = vcombine.low %v2498_v42, %v2500_v35  ;;  %v2472_v36 = vpop.permute.xlu1 %2471  ;;  %v2642_v40 = vcombine.high %v2497_v12, %v2499_v48 }
 0x2a7   : > { %2783 = vst [vmem:[#allocation2 + $0x20] sm:$0xff] %v2635_v23  ;;  %2785 = vst [vmem:[#allocation2 + $0x30] sm:$0xff] %v2636_v9  ;;  %v2658_v60 = vcombine.high %v2498_v42, %v2500_v35  ;;  %v2501_v26 = vsub.f32 %v4652_v41, %v2472_v36  ;;  %v2502_v49 = vsub.f32 %v4654_v47, %v2477_v56 }
 0x2a8   : > { %2787 = vst [vmem:[#allocation2 + $0x40] sm:$0xff] %v2637_v15  ;;  %2789 = vst [vmem:[#allocation2 + $0x50] sm:$0xff] %v2638_v2  ;;  %v2649_v14 = vrot.slane %v2641_v20, %v4689_v50  ;;  %v2665_v61 = vrot.slane %v2657_v34, %v4689_v50  ;;  %v2656_v31 = vrot.slane %v2642_v40, %v4689_v50 }
 0x2a9   : > { %2791 = vst [vmem:[#allocation2 + $0x60] sm:$0xff] %v2639_v29  ;;  %2793 = vst [vmem:[#allocation2 + $0x70] sm:$0xff] %v2640_v44  ;;  %v2487_v21 = vpop.permute.xlu0 %2486  ;;  %v2672_v25 = vrot.slane %v2658_v60, %v4689_v50 }
 0x2aa   : > { %v2482_v27 = vpop.permute.xlu1 %2481  ;;  %v2504_v17 = vsub.f32 %v4664_v22, %v2487_v21  ;;  %v2705_v53 = vcombine.low %v2649_v14, %v2665_v61  ;;  %v2706_v1 = vcombine.high %v2649_v14, %v2665_v61 }
 0x2ab   : > { %v2503_v55 = vsub.f32 %v4662_v13, %v2482_v27  ;;  %v2721_v16 = vcombine.low %v2656_v31, %v2672_v25  ;;  %v2722_v11 = vcombine.high %v2656_v31, %v2672_v25 }
 0x2ac   : > { %v2689_v57 = vcombine.low %v2502_v49, %v2504_v17  ;;  %v2690_v8 = vcombine.high %v2502_v49, %v2504_v17  ;;  %v2713_v54 = vrot.slane %v2705_v53, %v4699_v58  ;;  %v2720_v43 = vrot.slane %v2706_v1, %v4699_v58 }
 0x2ad   : > { %v2673_v59 = vcombine.low %v2501_v26, %v2503_v55  ;;  %v2674_v30 = vcombine.high %v2501_v26, %v2503_v55  ;;  %v2823_v6 = vpop.permute.xlu0 %2822  ;;  %v2729_v28 = vrot.slane %v2721_v16, %v4699_v58  ;;  %v2736_v51 = vrot.slane %v2722_v11, %v4699_v58 }
 0x2ae   : > { %v2820_v5 = vpop.permute.xlu1 %2819  ;;  %v2697_v13 = vrot.slane %v2689_v57, %v4689_v50  ;;  %v2704_v22 = vrot.slane %v2690_v8, %v4689_v50  ;;  %vm2825_vm13 = vcmp.eq.s32.totalorder %v2823_v6, 1 }
 0x2af   : > { %v2681_v41 = vrot.slane %v2673_v59, %v4689_v50  ;;  %v2688_v47 = vrot.slane %v2674_v30, %v4689_v50  ;;  %vm2824_vm11 = vcmp.eq.s32.totalorder %v2820_v5, 1  ;;  %vm2827_vm14 = vmand %vm2813_vm9, %vm2825_vm13 }
 0x2b0   : > { %vm2826_vm12 = vmand %vm2813_vm9, %vm2824_vm11 }
 0x2b1   : > { %v2737_v7 = vcombine.low %v2681_v41, %v2697_v13  ;;  %v2738_v19 = vcombine.high %v2681_v41, %v2697_v13  ;;  %v2753_v46 = vcombine.low %v2688_v47, %v2704_v22  ;;  %v2754_v0 = vcombine.high %v2688_v47, %v2704_v22 }
 0x2b2   : > { %v2828_v18 = vsel %vm2826_vm12, %v4717_v39, -1e+30 }
 0x2b3   : > { %v2745_v50 = vrot.slane %v2737_v7, %v4699_v58  ;;  %v2752_v32 = vrot.slane %v2738_v19, %v4699_v58  ;;  %v2761_v37 = vrot.slane %v2753_v46, %v4699_v58  ;;  %v2768_v10 = vrot.slane %v2754_v0, %v4699_v58 }
 0x2b4   : > { %v2830_v52 = vsel %vm2812_vm10, %v4717_v39, %v2828_v18  }
 0x2b5   : > { %v2769_v38 = vcombine.low %v2713_v54, %v2745_v50  ;;  %v2770_v62 = vcombine.high %v2713_v54, %v2745_v50  ;;  %v2771_v45 = vcombine.low %v2720_v43, %v2752_v32  ;;  %v2772_v12 = vcombine.high %v2720_v43, %v2752_v32 }
 0x2b6   : > { %v2773_v42 = vcombine.low %v2729_v28, %v2761_v37  ;;  %v2774_v48 = vcombine.high %v2729_v28, %v2761_v37  ;;  %v2775_v35 = vcombine.low %v2736_v51, %v2768_v10  ;;  %v2776_v33 = vcombine.high %v2736_v51, %v2768_v10  ;;  %3087 = sbr.rel (%p3252_p3) target bundleno = 873 (0x369), region = 116 }
 0x2b7   : > { %2780 = vst [vmem:[#allocation2 + $0x8] sm:$0xff] %v2769_v38  ;;  %2782 = vst [vmem:[#allocation2 + $0x18] sm:$0xff] %v2770_v62  ;;  %v2829_v58 = vsel %vm2827_vm14, %v2769_v38, -1e+30  ;;  %v4927_v9 = vmov %v2830_v52 }
 0x2b8   : > { %2784 = vst [vmem:[#allocation2 + $0x28] sm:$0xff] %v2771_v45  ;;  %2786 = vst [vmem:[#allocation2 + $0x38] sm:$0xff] %v2772_v12  ;;  %v2831_v39 = vsel %vm2812_vm10, %v2769_v38, %v2829_v58  }
 0x2b9   : > { %2788 = vst [vmem:[#allocation2 + $0x48] sm:$0xff] %v2773_v42  ;;  %2790 = vst [vmem:[#allocation2 + $0x58] sm:$0xff] %v2774_v48  ;;  %v4926_v23 = vmov %v2831_v39 }
 0x2ba   : > { %2792 = vst [vmem:[#allocation2 + $0x68] sm:$0xff] %v2775_v35  ;;  %2794 = vst [vmem:[#allocation2 + $0x78] sm:$0xff] %v2776_v33 }
 0x2bb LB: >> { %v3849_v15 = vmov 0   ;;  %s3850_s13 = smov 1   ;;  %s3851_s10 = smov 2   ;;  %v2892_v2 = vstv %s3827_s8  ;;  %v4928_v29 = vld [vmem:[#allocation18_spill] sm:$0xff]  ;;  %v4929_v44 = vld [vmem:[#allocation19_spill] sm:$0xff]  ;;  %v4930_v60 = vld [vmem:[#allocation16_spill] sm:$0xff]  ;;  %s3827_s8 = sphi %s4766_s8, %s2835_s8   ;;  %v3823_v52 = vphi %v2830_v52, %v4933_v52   ;;  %v3819_v39 = vphi %v2831_v39, %v4932_v39  }
 0x2bc   : >> { %3641 = vset.pattern.permute.xlu0 %v3849_v15  ;;  %3642 = vset.pattern.permute.xlu1 %v3849_v15  ;;  %vm2893_vm15 = vcmp.lt.s32.totalorder %v2892_v2, %v4928_v29  ;;  %vm2894_vm3 = vcmp.lt.s32.totalorder %v2892_v2, %v4929_v44  ;;  %v4931_v55 = vld [vmem:[#allocation17_spill] sm:$0xff]  ;;  %s3253_s12 = sshll.u32 %s3827_s8, 4  ;;  %s2835_s8 = sadd.s32 1, %s3827_s8  }
 0x2bd   : >> { %2844 = vrot.lane.b32.xlu0 %v3823_v52, %s3850_s13  ;;  %2850 = vrot.lane.b32.xlu1 %v3823_v52, %s3851_s10  ;;  %v2895_v56 = vsel %vm2893_vm15, 1, %v3849_v15  ;;  %v2896_v20 = vsel %vm2894_vm3, 1, %v3849_v15  ;;  %s2841_s18 = scalar_lea.vmem [#allocation2], %s3253_s12  ;;  %p2834_p5 = scmp.ge.s32.totalorder %s2835_s8, %s3988_s22 }
 0x2c1   : >> { %2846 = vrot.lane.b32.xlu0 %v3819_v39, %s3850_s13  ;;  %2852 = vrot.lane.b32.xlu1 %v3819_v39, %s3851_s10  ;;  %v2842_v10 = vld [vmem:[%s2841_s18] sm:$0xff]  ;;  %v2843_v12 = vld [vmem:[%s2841_s18 + $0x8] sm:$0xff] }
 0x2c5   : >> { %2898 = vperm.xlu0 %3641, %v2895_v56   ;;  %2901 = vperm.xlu1 %3642, %v2896_v20  }
 0x32f   : >> { %v2845_v34 = vpop.permute.xlu0 %2844  ;;  %v2851_v36 = vpop.permute.xlu1 %2850 }
 0x330   : >> { %v2848_v40 = vadd.f32 %v2845_v34, %v4681_v24  ;;  %v2854_v21 = vadd.f32 %v2851_v36, %v4930_v60 }
 0x332   : >> { %v2856_v14 = vmax.f32 %v3823_v52, %v2848_v40 }
 0x333   : >> { %v2847_v61 = vpop.permute.xlu0 %2846  ;;  %v2853_v27 = vpop.permute.xlu1 %2852 }
 0x334   : >> { %v2858_v26 = vmax.f32 %v2856_v14, %v2854_v21  ;;  %v2849_v49 = vadd.f32 %v2847_v61, %v4681_v24  ;;  %v2855_v17 = vadd.f32 %v2853_v27, %v4931_v55 }
 0x336   : >> { %v2860_v31 = vsub.f32 %v3823_v52, %v2858_v26  ;;  %v2866_v25 = vsub.f32 %v2848_v40, %v2858_v26  ;;  %v2874_v59 = vsub.f32 %v2854_v21, %v2858_v26  ;;  %v2857_v30 = vmax.f32 %v3819_v39, %v2849_v49 }
 0x338   : >> { %v2862_v57 = vmul.f32 1.442695, %v2860_v31  ;;  %v2868_v8 = vmul.f32 1.442695, %v2866_v25  ;;  %v2859_v53 = vmax.f32 %v2857_v30, %v2855_v17  ;;  %v2876_v1 = vmul.f32 1.442695, %v2874_v59 }
 0x33a   : >> { %3643 = vpow2.f32 %v2862_v57  ;;  %v2861_v5 = vsub.f32 %v3819_v39, %v2859_v53  ;;  %v2867_v41 = vsub.f32 %v2849_v49, %v2859_v53  ;;  %v2875_v47 = vsub.f32 %v2855_v17, %v2859_v53 }
 0x33b   : >> { %3645 = vpow2.f32 %v2868_v8 }
 0x33c   : >> { %v2864_v13 = vmul.f32 1.442695, %v2861_v5  ;;  %v2870_v22 = vmul.f32 1.442695, %v2867_v41  ;;  %3647 = vpow2.f32 %v2876_v1  ;;  %v2878_v6 = vmul.f32 1.442695, %v2875_v47 }
 0x33e   : >> { %3649 = vpow2.f32 %v2864_v13 }
 0x33f   : >> { %3651 = vpow2.f32 %v2870_v22 }
 0x340   : >> { %3653 = vpow2.f32 %v2878_v6  ;;  %v2899_v51 = vpop.permute.xlu0 %2898  ;;  %v2902_v48 = vpop.permute.xlu1 %2901 }
 0x341   : >> { %vm2903_vm4 = vcmp.eq.s32.totalorder %v2899_v51, 1  ;;  %vm2904_vm5 = vcmp.eq.s32.totalorder %v2902_v48, 1 }
 0x347   : >> { %v3644_v16 = vpop.eup %3643 }
 0x348   : >> { %v3646_v11 = vpop.eup %3645 }
 0x349   : >> { %v2872_v7 = vadd.f32 %v3646_v11, %v3644_v16  ;;  %v3648_v19 = vpop.eup %3647 }
 0x34b   : >> { %v3650_v46 = vpop.eup %3649  ;;  %v2880_v0 = vadd.f32 %v3648_v19, %v2872_v7 }
 0x34c   : >> { %v3652_v54 = vpop.eup %3651 }
 0x34d   : >> { %3655 = vlog2.f32 %v2880_v0  ;;  %v2873_v43 = vadd.f32 %v3652_v54, %v3650_v46  ;;  %v3654_v18 = vpop.eup %3653 }
 0x34f   : >> { %v2881_v50 = vadd.f32 %v3654_v18, %v2873_v43 }
 0x351   : >> { %3657 = vlog2.f32 %v2881_v50 }
 0x35a   : >> { %v3656_v32 = vpop.eup %3655 }
 0x35b   : >> { %v2883_v37 = vmul.f32 0.6931472, %v3656_v32 }
 0x35d   : >> { %v2886_v28 = vadd.f32 %v2883_v37, %v2858_v26 }
 0x35e   : >> { %v3658_v38 = vpop.eup %3657 }
 0x35f   : >> { %v2888_v62 = vadd.f32 %v2886_v28, %v2842_v10  ;;  %v2885_v45 = vmul.f32 0.6931472, %v3658_v38 }
 0x361   : >> { %v2890_v42 = vmax.f32 %v2888_v62, -1e+30  ;;  %v2887_v35 = vadd.f32 %v2885_v45, %v2859_v53 }
 0x363   : >> { %v2905_v33 = vsel %vm2903_vm4, %v2890_v42, %v3823_v52   ;;  %v2889_v58 = vadd.f32 %v2887_v35, %v2843_v12 }
 0x364   : >> { %v4933_v52 = vmov %v2905_v33  ;;  %2837 = sbr.rel (!%p2834_p5) target bundleno = 699 (0x2bb), region = 122 }
 0x365   : >> { %v2891_v23 = vmax.f32 %v2889_v58, -1e+30 }
 0x367   : >> { %v2906_v9 = vsel %vm2904_vm5, %v2891_v23, %v3819_v39  }
 0x368   : >> { %v4932_v39 = vmov %v2906_v9  ;;  %v4934_v23 = vmov (%p2834_p5), %v2906_v9  ;;  %v4935_v9 = vmov (%p2834_p5), %v2905_v33 }
 0x369 PF: > { %v4936_v52 = vmov 0   ;;  %v2907_v15 = vmul.u32 2, %v4666_v63  ;;  %v2908_v2 = vmul.u32 2, %v4660_v4  ;;  %v4937_v46 = vld [vmem:[#allocation18_spill] sm:$0xff]  ;;  %v4938_v18 = vld [vmem:[#allocation19_spill] sm:$0xff]  ;;  %s3262_s22 = sshll.u32 %s3807_s28, 8  ;;  %v3835_v9 = vphi %v4927_v9, %v4935_v9   ;;  %v3831_v23 = vphi %v4926_v23, %v4934_v23  }
 0x36a   : > { %3660 = vset.pattern.permute.xlu1 %v4936_v52  ;;  %3659 = vset.pattern.permute.xlu0 %v4936_v52  ;;  %vm2973_vm9 = vcmp.ge.s32.totalorder %v4937_v46, 1  ;;  %vm2974_vm13 = vcmp.ge.s32.totalorder %v4938_v18, 1  ;;  %s3003_s11 = sshll.u32 %s4755_s25, 4  ;;  %s4829_s21 = scalar_lea.hbm %s4886_s6, %s3262_s22  ;;  %s4831_s11 = int_to_ptr.vmem [resolvable:$true] %s3003_s11 }
 0x36b   : > { %2912 = vperm.xlu1 %3660, %v2907_v15   ;;  %v3254_v29 = vadd.s32 4294967295, %v2907_v15  ;;  %v3255_v24 = vadd.s32 4294967295, %v2908_v2  ;;  %s2990_s23 = scalar_lea.sflag [#allocation10], %s3977_s19  ;;  %s3713_s24 = scalar_lea.vmem %s4831_s11, 256 }
 0x36c   : > { %p3714_p6 = scmp.ne.s32.totalorder %s4831_s11, %s3713_s24  ;;  %s3852_s28 = smov [#allocation11]  }
 0x36d   : > { %2926 = vperm.xlu0 %3659, %v3254_v29   ;;  %s3717_s7 = sshll.u32 %s3852_s28, 4  ;;  %s3718_s7 = int_to_ptr.vmem [resolvable:$false] %s3717_s7 }
 0x36e   : > { %p3715_p8 = pnand %p3714_p6, %p3944_p0  ;;  %s3719_s8 = scalar_lea.vmem %s3718_s7, 512 }
 0x36f   : > { %2915 = vperm.xlu1 %3660, %v2908_v2   ;;  %p3720_p11 = scmp.lt.s32.totalorder %s4831_s11, %s3718_s7  ;;  %p3721_p12 = scmp.lt.s32.totalorder %s3719_s8, %s3713_s24 }
 0x370   : > { %p3716_p10 = pneg %p3715_p8 }
 0x371   : > { %2929 = vperm.xlu0 %3659, %v3255_v24   ;;  %p3722_p1 = por %p3721_p12, %p3720_p11 }
 0x373   : > { %p3723_p9 = pnand %p3722_p1, %p3716_p10 }
 0x3e6   : > { %v2913_v39 = vpop.permute.xlu1 %2912 }
 0x3e7   : > { %vm2917_vm6 = vcmp.eq.s32.totalorder %v4677_v3, %v2913_v39 }
 0x3e8   : > { %v2927_v44 = vpop.permute.xlu0 %2926  ;;  %v2919_v36 = vsel %vm2917_vm6, %v3835_v9, -1e+30 }
 0x3e9   : > { %vm2931_vm2 = vcmp.eq.s32.totalorder %v4677_v3, %v2927_v44 }
 0x3ea   : > { %v2933_v56 = vsel %vm2931_vm2, %v3835_v9, -1e+30  ;;  %v2916_v20 = vpop.permute.xlu1 %2915 }
 0x3eb   : > { %2935 = vmax.xlane.f32.xlu0 %v2933_v56  ;;  %vm2918_vm8 = vcmp.eq.s32.totalorder %v4677_v3, %v2916_v20 }
 0x3ec   : > { %v2930_v34 = vpop.permute.xlu0 %2929  ;;  %v2920_v60 = vsel %vm2918_vm8, %v3831_v23, -1e+30 }
 0x3ed   : > { %vm2932_vm7 = vcmp.eq.s32.totalorder %v4677_v3, %v2930_v34 }
 0x3ee   : > { %v2934_v40 = vsel %vm2932_vm7, %v3831_v23, -1e+30 }
 0x3ef   : > { %2921 = vmax.xlane.f32.xlu0 %v2919_v36  ;;  %2937 = vmax.xlane.f32.xlu1 %v2934_v40 }
 0x3f3   : > { %2923 = vmax.xlane.f32.xlu0 %v2920_v60 }
 0x474   : > { %v2936_v21 = vpop.xlane.xlu0 %2935 }
 0x475   : > { %v2939_v14 = vsel %vm2814_vm1, %v2936_v21, -1e+30 }
 0x478   : > { %v2922_v61 = vpop.xlane.xlu0 %2921  ;;  %v2938_v27 = vpop.xlane.xlu1 %2937 }
 0x479   : > { %v2941_v26 = vmax.f32 %v2922_v61, %v2939_v14  ;;  %v2940_v17 = vsel %vm2815_vm0, %v2938_v27, -1e+30 }
 0x47b   : > { %v2943_v49 = vsub.f32 %v2922_v61, %v2941_v26  ;;  %v2949_v55 = vsub.f32 %v2939_v14, %v2941_v26 }
 0x47c   : > { %v2924_v31 = vpop.xlane.xlu0 %2923 }
 0x47d   : > { %v2945_v25 = vmul.f32 1.442695, %v2943_v49  ;;  %v2951_v59 = vmul.f32 1.442695, %v2949_v55  ;;  %v2942_v3 = vmax.f32 %v2924_v31, %v2940_v17 }
 0x47f   : > { %3661 = vpow2.f32 %v2945_v25  ;;  %v2944_v30 = vsub.f32 %v2924_v31, %v2942_v3  ;;  %v2950_v57 = vsub.f32 %v2940_v17, %v2942_v3 }
 0x480   : > { %3663 = vpow2.f32 %v2951_v59 }
 0x481   : > { %v2947_v8 = vmul.f32 1.442695, %v2944_v30  ;;  %v2953_v53 = vmul.f32 1.442695, %v2950_v57 }
 0x483   : > { %3665 = vpow2.f32 %v2947_v8 }
 0x484   : > { %3667 = vpow2.f32 %v2953_v53 }
 0x48c   : > { %v3662_v63 = vpop.eup %3661 }
 0x48d   : > { %v3664_v1 = vpop.eup %3663 }
 0x48e   : > { %v2955_v5 = vadd.f32 %v3664_v1, %v3662_v63 }
 0x490   : > { %v3666_v41 = vpop.eup %3665  ;;  %3669 = vlog2.f32 %v2955_v5 }
 0x491   : > { %v3668_v47 = vpop.eup %3667 }
 0x492   : > { %v2956_v4 = vadd.f32 %v3668_v47, %v3666_v41 }
 0x494   : > { %3671 = vlog2.f32 %v2956_v4 }
 0x49d   : > { %v3670_v13 = vpop.eup %3669 }
 0x49e   : > { %v2958_v22 = vmul.f32 0.6931472, %v3670_v13 }
 0x4a0   : > { %v2961_v6 = vadd.f32 %v2958_v22, %v2941_v26 }
 0x4a1   : > { %v3672_v16 = vpop.eup %3671 }
 0x4a2   : > { %v2963_v11 = vsub.f32 0.0, %v2961_v6  ;;  %v2960_v7 = vmul.f32 0.6931472, %v3672_v16 }
 0x4a4   : > { %v2962_v19 = vadd.f32 %v2960_v7, %v2942_v3  ;;  %vm2965_vm0 = vcmp.gt.f32.partialorder %v2963_v11, 1e+29  ;;  %vm2967_vm1 = vcmp.ne.f32.partialorder %v2963_v11, %v2963_v11 }
 0x4a5   : > { %vm2969_vm10 = vmor %vm2965_vm0, %vm2967_vm1 }
 0x4a6   : > { %v2964_v0 = vsub.f32 0.0, %v2962_v19  ;;  %v2971_v54 = vsel %vm2969_vm10, 0.0, %v2963_v11 }
 0x4a7   : > { %v2975_v43 = vsel %vm2973_vm9, %v2971_v54, 0.0 }
 0x4a8   : > { %2979 = vperm.xlu1 %3660, %v2975_v43   ;;  %vm2966_vm11 = vcmp.gt.f32.partialorder %v2964_v0, 1e+29  ;;  %vm2968_vm12 = vcmp.ne.f32.partialorder %v2964_v0, %v2964_v0 }
 0x4a9   : > { %vm2970_vm14 = vmor %vm2966_vm11, %vm2968_vm12 }
 0x4aa   : > { %v2972_v50 = vsel %vm2970_vm14, 0.0, %v2964_v0 }
 0x4ab   : > { %v2976_v32 = vsel %vm2974_vm13, %v2972_v50, 0.0 }
 0x4ac   : > { %2984 = vperm.xlu0 %3659, %v2976_v32  }
 0x523   : > { %v2980_v37 = vpop.permute.xlu1 %2979 }
 0x524   : > { %2987 = vst [vmem:[%s4755_s25] sm:$0xff] %v2980_v37 }
 0x527   : > { %v2985_v10 = vpop.permute.xlu0 %2984 }
 0x528   : > { %2988 = vst [vmem:[%s4755_s25 + $0x8] sm:$0xff] %v2985_v10 }
 0x529   : > { %3726 = shalt.err (!%p3723_p9)
}
 0x52a   : > { %s3727_s25 = scalar_lea.hbm %s4829_s21, 256  ;;  %s3731_s12 = scalar_lea.hbm %s4886_s6, 512 }
 0x52b   : > { %p3728_p4 = scmp.ne.s32.totalorder %s4829_s21, %s3727_s25  ;;  %p3732_p3 = scmp.lt.s32.totalorder %s4829_s21, %s4886_s6 }
 0x52c   : > { %p3733_p5 = scmp.lt.s32.totalorder %s3731_s12, %s3727_s25 }
 0x52d   : > { %p3729_p7 = pnand %p3728_p4, %p3944_p0 }
 0x52e   : > { %p3734_p6 = por %p3733_p5, %p3732_p3 }
 0x52f   : > { %p3730_p13 = pneg %p3729_p7 }
 0x531   : > { %p3735_p8 = pnand %p3734_p6, %p3730_p13 }
 0x533   : > { %3738 = shalt.err (!%p3735_p8)
}
 0x534   : > { %s3853_s17 = smov 128   ;;  %s3854_s20 = smov 8  }
 0x535   : > { %3425 = dma.vmem_to_hbm [thread:$0]  (%p3944_p0), %s4831_s11, 256, %s4829_s21, %s2990_s23, %s3853_s17, %s3853_s17, %s3854_s20  }
 0x536 PF: > { %s3018_s24 = sand.u32 1, %s3795_s26   ;;  %p4939_p10 = scmp.ge.s32.totalorder %s3815_s30, 2 }
 0x537   : > { %s3019_s28 = scalar_lea.sflag [#allocation10], %s3018_s24 }
 0x538   : > { %p3432_p11 = pnand %p4939_p10, %p3951_p2 }
 0x53a   : > { %p3433_p12 = pneg %p3432_p11 }
 0x53c   : > { %3790 = dma.done.wait (%p3433_p12), %s3019_s28, 256  }
 0x53d   : > { %3792 = vsyncadd (%p3433_p12), %s3019_s28, 4294967040  ;;  %s28_s30 = sadd.s32 1, %s3815_s30   ;;  %s4940_s26 = smov %s3799_s0 }
 0x53e   : > { %p25_p1 = scmp.ge.s32.totalorder %s28_s30, 4   ;;  %s4941_s0 = smov %s3803_s27 }
 0x53f   : > { %s4942_s27 = smov %s3949_s15  ;;  %s4943_s28 = smov %s3811_s29 }
 0x540   : > { %s4944_s29 = smov %s4946_s9  ;;  %27 = sbr.rel (!%p25_p1) target bundleno = 21 (0x15), region = 133 }
 0x545   :  { %3024 = vsyncpa [#allocation9], 1 }
 0x546   :  { %3026 = vsyncpa [#allocation9 + $0x1], 1 }
 0x547   :  { %3027 = vsyncpa [#allocation10], 1 }
 0x548   :  { %3029 = vsyncpa [#allocation10 + $0x1], 1 }

</bundles_post_ra>
